<compile_context>
chip_gen: v6e
topology: v6e:2x2x1
jax: 0.10.0
libtpu: 0.0.40
codegen_flags: <defaults>
</compile_context>

<pallas_src>
import functools

import jax
import jax.numpy as jnp
from jax.experimental import pallas as pl
from jax.experimental.pallas import tpu as pltpu


def _ceil_to(x: int, m: int) -> int:
    return ((x + m - 1) // m) * m


def _pick_tile(np_: int, cap: int, min_blocks: int = 1) -> int:
    """Largest multiple of 128 that divides np_ (itself a multiple of 128),
    is <= cap, and leaves at least `min_blocks` blocks along the axis."""
    m = np_ // 128
    max_d = max(1, min(cap // 128, m // max(min_blocks, 1)))
    best = 1
    for d in range(1, max_d + 1):
        if m % d == 0:
            best = d
    return best * 128


def _vmem_limit_bytes(default: int = 48 << 20) -> int:
    """Scoped-VMEM limit per generation (v5e/v6e: 128 MiB physical, v7x: 64 MiB)."""
    try:
        cap = getattr(pltpu.get_tpu_info(), "vmem_capacity_bytes", None)
        if cap:
            if cap >= (100 << 20):           # v5e / v6e
                return 96 << 20
            return min(int(cap * 0.6), 40 << 20)   # v7x
    except Exception:
        pass
    return default


# ---------------------------------------------------------------------------
# Kernels
# ---------------------------------------------------------------------------

def _gcn_prop_kernel(a_ref, fw_ref, d_ref, b_ref, o_ref, acc_ref, *,
                     tk, relu, scale_out):
    """One GCNConv propagation row-tile: o = [relu](d_row * sum_k A[i,k] @ FW[k] + b).

    a_ref  : [tm, tk] bf16   binary (A+I) tile (streamed, reduction axis last)
    fw_ref : [Np, C ] bf16   hoisted (D^{-1/2} X) @ W, fully VMEM-resident
    d_ref  : [tm, 1 ] f32    D^{-1/2} for this row tile
    b_ref  : [1 , C ] f32    bias (resident)
    o_ref  : [tm, C ]        output (optionally re-scaled by D^{-1/2} for next layer)
    """
    k = pl.program_id(1)

    @pl.when(k == 0)
    def _():
        acc_ref[...] = jnp.zeros_like(acc_ref)

    start = pl.multiple_of(k * tk, tk)
    acc_ref[...] += jnp.dot(a_ref[...], fw_ref[pl.ds(start, tk), :],
                            preferred_element_type=jnp.float32)

    @pl.when(k == pl.num_programs(1) - 1)
    def _():
        d = d_ref[...]
        out = d * acc_ref[...] + b_ref[...]
        if relu:
            out = jnp.maximum(out, 0.0)
        if scale_out:
            out = d * out          # pre-apply the next layer's column normalization
        o_ref[...] = out.astype(o_ref.dtype)


def _decoder_kernel(zr_ref, zc_ref, adj_ref):
    """InnerProductDecoder.forward_all tile: sigmoid(z_rows @ z_cols.T).

    dot_general dimension_numbers contract the last dims, so no in-kernel
    transpose is needed and the lane-dense [dm, dn] stores stay unmasked.
    Logits / sigmoid stay f32 (portable across v5e/v6e/v7x); only the store
    narrows to the output dtype (bf16 by default).
    """
    logits = jax.lax.dot_general(
        zr_ref[...], zc_ref[...],
        dimension_numbers=(((1,), (1,)), ((), ())),
        preferred_element_type=jnp.float32)
    adj_ref[...] = jax.nn.sigmoid(logits).astype(adj_ref.dtype)


# ---------------------------------------------------------------------------
# pallas_call wrappers
# ---------------------------------------------------------------------------

def _gcn_propagate(a_bf16, fw, d_col, bias, *, relu, scale_out, out_dtype,
                   tm, tk, vmem_limit):
    Np = a_bf16.shape[0]
    C = fw.shape[1]
    kernel = functools.partial(_gcn_prop_kernel, tk=tk, relu=relu,
                               scale_out=scale_out)
    return pl.pallas_call(
        kernel,
        out_shape=jax.ShapeDtypeStruct((Np, C), out_dtype),
        grid_spec=pltpu.PrefetchScalarGridSpec(
            num_scalar_prefetch=0,
            grid=(Np // tm, Np // tk),
            in_specs=[
                pl.BlockSpec((tm, tk), lambda i, k: (i, k)),   # (A+I) tile (bf16)
                pl.BlockSpec((Np, C), lambda i, k: (0, 0)),    # FW resident (tiny)
                pl.BlockSpec((tm, 1), lambda i, k: (i, 0)),    # D^{-1/2} rows
                pl.BlockSpec((1, C), lambda i, k: (0, 0)),     # bias (resident)
            ],
            out_specs=pl.BlockSpec((tm, C), lambda i, k: (i, 0)),
            scratch_shapes=[pltpu.VMEM((tm, C), jnp.float32)],
        ),
        compiler_params=pltpu.CompilerParams(
            dimension_semantics=("parallel", "arbitrary"),
            vmem_limit_bytes=vmem_limit),
    )(a_bf16, fw, d_col, bias)


def _inner_product_decode(z, *, dm, dn, adj_dtype, vmem_limit):
    Np, O = z.shape
    return pl.pallas_call(
        _decoder_kernel,
        out_shape=jax.ShapeDtypeStruct((Np, Np), adj_dtype),
        grid_spec=pltpu.PrefetchScalarGridSpec(
            num_scalar_prefetch=0,
            grid=(Np // dm, Np // dn),
            in_specs=[
                pl.BlockSpec((dm, O), lambda i, j: (i, 0)),   # z row tile (bf16)
                pl.BlockSpec((dn, O), lambda i, j: (j, 0)),   # z "col" tile (contract last dim)
            ],
            out_specs=pl.BlockSpec((dm, dn), lambda i, j: (i, j)),
        ),
        compiler_params=pltpu.CompilerParams(
            dimension_semantics=("parallel", "parallel"),
            vmem_limit_bytes=vmem_limit),
    )(z, z)


# ---------------------------------------------------------------------------
# Forward pass
# ---------------------------------------------------------------------------

def vgae_forward(x, edge_index, w1, b1, wmu, bmu, *, adj_dtype=jnp.bfloat16):
    """x: [N, F_in] f32, edge_index: [2, E] int (edges in both directions).

    Returns sigmoid(z z^T), z = mu  (eval-mode VGAE forward).
    """
    N = x.shape[0]
    E = edge_index.shape[1]
    edge_index = edge_index.astype(jnp.int32)

    # ---- padded size (multiple of 128) and tile selection (divisors of Np)
    Np = _ceil_to(max(N, 1), 128)
    pad = Np - N
    tm = _pick_tile(Np, 512, min_blocks=2)    # A row tile; >=2 blocks feeds both v7x TCs
    tk = _pick_tile(Np, 2048, min_blocks=1)   # reduction axis: big bf16 A slabs
    dm = tm                                    # decoder row tile
    dn = _pick_tile(Np, 2048, min_blocks=1)   # decoder lane-dense output width

    # ---- host glue (O(E) + one bf16 N^2 scatter; normalization stays in-kernel)
    # Degrees of (A+I) from an O(E) segment count (+1 self-loop); assumes the usual
    # PyG convention of no duplicate edges / pre-existing self-loops in edge_index.
    deg = jnp.zeros((N,), jnp.float32).at[edge_index[0]].add(1.0) + 1.0
    d = jax.lax.rsqrt(deg)                       # deg >= 1 (self-loop), no zero guard needed
    d_col = jnp.pad(d, (0, pad)).reshape(Np, 1)

    # Binary (A+I), built directly at padded size, directly in bf16 (0/1 exact in bf16).
    diag = jnp.arange(N, dtype=jnp.int32)
    a_bf16 = (jnp.zeros((Np, Np), jnp.bfloat16)
              .at[edge_index[0], edge_index[1]].set(jnp.ones((E,), jnp.bfloat16))
              .at[diag, diag].set(1.0))

    # Hoisted feature transforms: FW = (D^{-1/2} X) @ W (tiny, out of the N^2 loop).
    xs = x.astype(jnp.float32) * d[:, None]
    fw1 = jnp.pad(jnp.dot(xs, w1.astype(jnp.float32),
                          preferred_element_type=jnp.float32),
                  ((0, pad), (0, 0))).astype(jnp.bfloat16)
    b1_2d = b1.reshape(1, -1).astype(jnp.float32)
    bmu_2d = bmu.reshape(1, -1).astype(jnp.float32)

    vmem_limit = _vmem_limit_bytes()

    # GCNConv 1 (+ ReLU); output pre-scaled by D^{-1/2} for the next propagation.
    hs = _gcn_propagate(a_bf16, fw1, d_col, b1_2d,
                        relu=True, scale_out=True, out_dtype=jnp.bfloat16,
                        tm=tm, tk=tk, vmem_limit=vmem_limit)

    fw2 = jnp.dot(hs, wmu.astype(jnp.bfloat16),
                  preferred_element_type=jnp.float32).astype(jnp.bfloat16)

    # GCNConv 2 (mu head); z = mu in eval mode.  bf16 z keeps the decoder on the
    # native bf16 MXU path and halves its input traffic.
    z = _gcn_propagate(a_bf16, fw2, d_col, bmu_2d,
                       relu=False, scale_out=False, out_dtype=jnp.bfloat16,
                       tm=tm, tk=tk, vmem_limit=vmem_limit)
    # TODO(synk): training-mode reparameterization (mu + randn * exp(logstd)), the
    # conv_logstd head, KL / recon losses are not on the eval forward path; omitted.

    adj = _inner_product_decode(z, dm=dm, dn=dn, adj_dtype=adj_dtype,
                                vmem_limit=vmem_limit)
    # TODO(synk): for large sparse graphs, replace the dense bf16 (A+I) stream with a
    # scalar-prefetch padded-CSR SpMM (O(E) HBM reads instead of O(N^2)).
    return adj[:N, :N] if pad else adj


# ---------------------------------------------------------------------------
# Pure-JAX f32 reference + demo
# ---------------------------------------------------------------------------

def _reference_forward(x, edge_index, w1, b1, wmu, bmu):
    N = x.shape[0]
    A = jnp.zeros((N, N), jnp.float32).at[edge_index[0], edge_index[1]].set(1.0)
    A = jnp.maximum(A, jnp.eye(N, dtype=jnp.float32))
    deg = A.sum(axis=1)
    d = jnp.where(deg > 0, 1.0 / jnp.sqrt(deg), 0.0)
    A_hat = d[:, None] * A * d[None, :]
    h = jnp.maximum(A_hat @ (x @ w1) + b1, 0.0)
    mu = A_hat @ (h @ wmu) + bmu
    return jax.nn.sigmoid(mu @ mu.T)


def _glorot(key, shape):
    fan_in, fan_out = shape
    limit = float(jnp.sqrt(6.0 / (fan_in + fan_out)))
    return jax.random.uniform(key, shape, jnp.float32, -limit, limit)


def _ring_edges(n):
    src = jnp.arange(n, dtype=jnp.int32)
    dst = (src + 1) % n
    return jnp.concatenate([jnp.stack([src, dst]), jnp.stack([dst, src])], axis=1)


if __name__ == "__main__":
    F_IN, OUT = 8, 4
    HID = 2 * OUT  # standard VariationalGCNEncoder hidden width

    key = jax.random.PRNGKey(0)
    kx, k1, k2, kx2 = jax.random.split(key, 4)

    # GCNConv params: glorot weights, zero biases (matches PyG reset())
    W1 = _glorot(k1, (F_IN, HID))
    b1 = jnp.zeros((HID,), jnp.float32)
    Wmu = _glorot(k2, (HID, OUT))
    bmu = jnp.zeros((OUT,), jnp.float32)

    fwd = jax.jit(vgae_forward)

    # --- small graph (single-tile path) ---
    N = 16
    x = jax.random.normal(kx, (N, F_IN), jnp.float32)
    ei = _ring_edges(N)
    adj = jax.block_until_ready(fwd(x, ei, W1, b1, Wmu, bmu))
    ref = _reference_forward(x, ei, W1, b1, Wmu, bmu)
    adj32 = adj.astype(jnp.float32)
    assert adj.shape == (N, N)
    assert bool(jnp.all(jnp.isfinite(adj32))) and bool(jnp.all((adj32 >= 0) & (adj32 <= 1)))
    err = float(jnp.max(jnp.abs(adj32 - ref)))
    assert err < 5e-2, f"small-graph mismatch vs f32 reference: {err}"

    # --- larger graph (exercises 128-granular padding + the multi-tile pipelined path) ---
    N2 = 600
    x2 = jax.random.normal(kx2, (N2, F_IN), jnp.float32)
    ei2 = _ring_edges(N2)
    adj2 = jax.block_until_ready(fwd(x2, ei2, W1, b1, Wmu, bmu))
    ref2 = _reference_forward(x2, ei2, W1, b1, Wmu, bmu)
    adj2_32 = adj2.astype(jnp.float32)
    assert adj2.shape == (N2, N2) and bool(jnp.all(jnp.isfinite(adj2_32)))
    err2 = float(jnp.max(jnp.abs(adj2_32 - ref2)))
    assert err2 < 5e-2, f"tiled-graph mismatch vs f32 reference: {err2}"

    print("KERNEL_OK")
</pallas_src>

<mosaic_0001>
module attributes {stable_mosaic.version = 11 : i64} {
  func.func private @main(%arg0: i32) attributes {dimension_semantics = [#tpu.dimension_semantics<core_parallel>], iteration_bounds = array<i64: 2>, tpu.core_type = #tpu.core_type<sc_scalar_subcore>, window_params = []} {
    return
  }
}

module attributes {stable_mosaic.version = 11 : i64} {
  func.func private @main(%arg0: i32) attributes {dimension_semantics = [#tpu.dimension_semantics<core_parallel>], iteration_bounds = array<i64: 2>, tpu.core_type = #tpu.core_type<sc_scalar_subcore>, window_params = []} {
    return
  }
}

module attributes {stable_mosaic.version = 11 : i64} {
  func.func @_gcn_prop_kernel(%arg0: i32, %arg1: i32, %arg2: memref<128x128xbf16, #tpu.memory_space<vmem>>, %arg3: memref<128x8xbf16, #tpu.memory_space<vmem>>, %arg4: memref<128x1xf32, #tpu.memory_space<vmem>>, %arg5: memref<1x8xf32, #tpu.memory_space<vmem>>, %arg6: memref<128x8xbf16, #tpu.memory_space<vmem>>, %arg7: memref<128x8xf32, #tpu.memory_space<vmem>>) attributes {dimension_semantics = [#tpu.dimension_semantics<parallel>, #tpu.dimension_semantics<arbitrary>], iteration_bounds = array<i64: 1, 1>, scalar_prefetch = 0 : i64, scratch_operands = 1 : i64, tpu.core_type = #tpu.core_type<tc>, window_params = [{transform_indices = @transform_0, window_bounds = array<i64: 128, 128>}, {pipeline_mode = #tpu.pipeline_mode<synchronous>, transform_indices = @transform_1, window_bounds = array<i64: 128, 8>}, {transform_indices = @transform_2, window_bounds = array<i64: 128, 1>}, {pipeline_mode = #tpu.pipeline_mode<synchronous>, transform_indices = @transform_3, window_bounds = array<i64: 1, 8>}, {transform_indices = @transform_4, window_bounds = array<i64: 128, 8>}]} {
    %c0_i32 = arith.constant 0 : i32
    %0 = arith.cmpi eq, %arg1, %c0_i32 : i32
    %1 = arith.extui %0 : i1 to i32
    %c0_i32_0 = arith.constant 0 : i32
    %2 = arith.cmpi ne, %1, %c0_i32_0 : i32
    scf.if %2 {
      %cst_9 = arith.constant 0.000000e+00 : f32
      %15 = vector.broadcast %cst_9 : f32 to vector<128x8xf32>
      %c0_10 = arith.constant 0 : index
      %c0_11 = arith.constant 0 : index
      %16 = vector.load %arg7[%c0_10, %c0_11] : memref<128x8xf32, #tpu.memory_space<vmem>>, vector<128x8xf32>
      tpu.vector_store %arg7[%c0_10, %c0_11], %15 {strides = array<i32>} : memref<128x8xf32, #tpu.memory_space<vmem>>, vector<128x8xf32>,
    } else {
    }
    %c128_i32 = arith.constant 128 : i32
    %3 = arith.muli %arg1, %c128_i32 : i32
    %4 = tpu.assume_multiple %3, 128 : i32
    %c0 = arith.constant 0 : index
    %c0_1 = arith.constant 0 : index
    %5 = vector.load %arg7[%c0, %c0_1] : memref<128x8xf32, #tpu.memory_space<vmem>>, vector<128x8xf32>
    %c0_2 = arith.constant 0 : index
    %c0_3 = arith.constant 0 : index
    %6 = vector.load %arg2[%c0_2, %c0_3] : memref<128x128xbf16, #tpu.memory_space<vmem>>, vector<128x128xbf16>
    %7 = arith.index_cast %4 : i32 to index
    %c0_4 = arith.constant 0 : index
    %8 = vector.load %arg3[%7, %c0_4] : memref<128x8xbf16, #tpu.memory_space<vmem>>, vector<128x8xbf16>
    %cst = arith.constant dense<0.000000e+00> : vector<128x8xf32>
    %9 = tpu.matmul %6, %8, %cst {dimension_numbers = #tpu.dot_dimension_numbers<[1], [0], [0], [1], [0, 0, 1, 1], [], []>} : vector<128x128xbf16>, vector<128x8xbf16>, vector<128x8xf32> -> vector<128x8xf32>
    %10 = arith.addf %5, %9 : vector<128x8xf32>
    %c0_5 = arith.constant 0 : index
    %c0_6 = arith.constant 0 : index
    %11 = vector.load %arg7[%c0_5, %c0_6] : memref<128x8xf32, #tpu.memory_space<vmem>>, vector<128x8xf32>
    tpu.vector_store %arg7[%c0_5, %c0_6], %10 {strides = array<i32>} : memref<128x8xf32, #tpu.memory_space<vmem>>, vector<128x8xf32>,
    %c0_i32_7 = arith.constant 0 : i32
    %12 = arith.cmpi eq, %arg1, %c0_i32_7 : i32
    %13 = arith.extui %12 : i1 to i32
    %c0_i32_8 = arith.constant 0 : i32
    %14 = arith.cmpi ne, %13, %c0_i32_8 : i32
    scf.if %14 {
      %c0_9 = arith.constant 0 : index
      %c0_10 = arith.constant 0 : index
      %15 = vector.load %arg4[%c0_9, %c0_10] : memref<128x1xf32, #tpu.memory_space<vmem>>, vector<128x1xf32>
      %c0_11 = arith.constant 0 : index
      %c0_12 = arith.constant 0 : index
      %16 = vector.load %arg7[%c0_11, %c0_12] : memref<128x8xf32, #tpu.memory_space<vmem>>, vector<128x8xf32>
      %17 = vector.broadcast %15 : vector<128x1xf32> to vector<128x8xf32>
      %18 = arith.mulf %17, %16 : vector<128x8xf32>
      %c0_13 = arith.constant 0 : index
      %c0_14 = arith.constant 0 : index
      %19 = vector.load %arg5[%c0_13, %c0_14] : memref<1x8xf32, #tpu.memory_space<vmem>>, vector<1x8xf32>
      %20 = vector.broadcast %19 : vector<1x8xf32> to vector<128x8xf32>
      %21 = arith.addf %18, %20 : vector<128x8xf32>
      %cst_15 = arith.constant 0.000000e+00 : f32
      %22 = vector.broadcast %cst_15 : f32 to vector<128x8xf32>
      %23 = arith.maximumf %21, %22 : vector<128x8xf32>
      %24 = vector.broadcast %15 : vector<128x1xf32> to vector<128x8xf32>
      %25 = arith.mulf %24, %23 : vector<128x8xf32>
      %26 = arith.truncf %25 : vector<128x8xf32> to vector<128x8xbf16>
      %c0_16 = arith.constant 0 : index
      %c0_17 = arith.constant 0 : index
      %27 = vector.load %arg6[%c0_16, %c0_17] : memref<128x8xbf16, #tpu.memory_space<vmem>>, vector<128x8xbf16>
      tpu.vector_store %arg6[%c0_16, %c0_17], %26 {strides = array<i32>} : memref<128x8xbf16, #tpu.memory_space<vmem>>, vector<128x8xbf16>,
    } else {
    }
    return
  }
  func.func @transform_0(%arg0: i32, %arg1: i32) -> (i32, i32) {
    %c0_i32 = arith.constant 0 : i32
    return %arg0, %arg1 : i32, i32
  }
  func.func @transform_1(%arg0: i32, %arg1: i32) -> (i32, i32) {
    %c0_i32 = arith.constant 0 : i32
    %c0_i32_0 = arith.constant 0 : i32
    %c0_i32_1 = arith.constant 0 : i32
    return %c0_i32, %c0_i32_0 : i32, i32
  }
  func.func @transform_2(%arg0: i32, %arg1: i32) -> (i32, i32) {
    %c0_i32 = arith.constant 0 : i32
    %c0_i32_0 = arith.constant 0 : i32
    return %arg0, %c0_i32 : i32, i32
  }
  func.func @transform_3(%arg0: i32, %arg1: i32) -> (i32, i32) {
    %c0_i32 = arith.constant 0 : i32
    %c0_i32_0 = arith.constant 0 : i32
    %c0_i32_1 = arith.constant 0 : i32
    return %c0_i32, %c0_i32_0 : i32, i32
  }
  func.func @transform_4(%arg0: i32, %arg1: i32) -> (i32, i32) {
    %c0_i32 = arith.constant 0 : i32
    %c0_i32_0 = arith.constant 0 : i32
    return %arg0, %c0_i32 : i32, i32
  }
}

module attributes {stable_mosaic.version = 11 : i64} {
  func.func @_gcn_prop_kernel(%arg0: i32, %arg1: i32, %arg2: memref<128x128xbf16, #tpu.memory_space<vmem>>, %arg3: memref<128x4xbf16, #tpu.memory_space<vmem>>, %arg4: memref<128x1xf32, #tpu.memory_space<vmem>>, %arg5: memref<1x4xf32, #tpu.memory_space<vmem>>, %arg6: memref<128x4xbf16, #tpu.memory_space<vmem>>, %arg7: memref<128x4xf32, #tpu.memory_space<vmem>>) attributes {dimension_semantics = [#tpu.dimension_semantics<parallel>, #tpu.dimension_semantics<arbitrary>], iteration_bounds = array<i64: 1, 1>, scalar_prefetch = 0 : i64, scratch_operands = 1 : i64, tpu.core_type = #tpu.core_type<tc>, window_params = [{transform_indices = @transform_0, window_bounds = array<i64: 128, 128>}, {pipeline_mode = #tpu.pipeline_mode<synchronous>, transform_indices = @transform_1, window_bounds = array<i64: 128, 4>}, {transform_indices = @transform_2, window_bounds = array<i64: 128, 1>}, {pipeline_mode = #tpu.pipeline_mode<synchronous>, transform_indices = @transform_3, window_bounds = array<i64: 1, 4>}, {transform_indices = @transform_4, window_bounds = array<i64: 128, 4>}]} {
    %c0_i32 = arith.constant 0 : i32
    %0 = arith.cmpi eq, %arg1, %c0_i32 : i32
    %1 = arith.extui %0 : i1 to i32
    %c0_i32_0 = arith.constant 0 : i32
    %2 = arith.cmpi ne, %1, %c0_i32_0 : i32
    scf.if %2 {
      %cst_9 = arith.constant 0.000000e+00 : f32
      %15 = vector.broadcast %cst_9 : f32 to vector<128x4xf32>
      %c0_10 = arith.constant 0 : index
      %c0_11 = arith.constant 0 : index
      %16 = vector.load %arg7[%c0_10, %c0_11] : memref<128x4xf32, #tpu.memory_space<vmem>>, vector<128x4xf32>
      tpu.vector_store %arg7[%c0_10, %c0_11], %15 {strides = array<i32>} : memref<128x4xf32, #tpu.memory_space<vmem>>, vector<128x4xf32>,
    } else {
    }
    %c128_i32 = arith.constant 128 : i32
    %3 = arith.muli %arg1, %c128_i32 : i32
    %4 = tpu.assume_multiple %3, 128 : i32
    %c0 = arith.constant 0 : index
    %c0_1 = arith.constant 0 : index
    %5 = vector.load %arg7[%c0, %c0_1] : memref<128x4xf32, #tpu.memory_space<vmem>>, vector<128x4xf32>
    %c0_2 = arith.constant 0 : index
    %c0_3 = arith.constant 0 : index
    %6 = vector.load %arg2[%c0_2, %c0_3] : memref<128x128xbf16, #tpu.memory_space<vmem>>, vector<128x128xbf16>
    %7 = arith.index_cast %4 : i32 to index
    %c0_4 = arith.constant 0 : index
    %8 = vector.load %arg3[%7, %c0_4] : memref<128x4xbf16, #tpu.memory_space<vmem>>, vector<128x4xbf16>
    %cst = arith.constant dense<0.000000e+00> : vector<128x4xf32>
    %9 = tpu.matmul %6, %8, %cst {dimension_numbers = #tpu.dot_dimension_numbers<[1], [0], [0], [1], [0, 0, 1, 1], [], []>} : vector<128x128xbf16>, vector<128x4xbf16>, vector<128x4xf32> -> vector<128x4xf32>
    %10 = arith.addf %5, %9 : vector<128x4xf32>
    %c0_5 = arith.constant 0 : index
    %c0_6 = arith.constant 0 : index
    %11 = vector.load %arg7[%c0_5, %c0_6] : memref<128x4xf32, #tpu.memory_space<vmem>>, vector<128x4xf32>
    tpu.vector_store %arg7[%c0_5, %c0_6], %10 {strides = array<i32>} : memref<128x4xf32, #tpu.memory_space<vmem>>, vector<128x4xf32>,
    %c0_i32_7 = arith.constant 0 : i32
    %12 = arith.cmpi eq, %arg1, %c0_i32_7 : i32
    %13 = arith.extui %12 : i1 to i32
    %c0_i32_8 = arith.constant 0 : i32
    %14 = arith.cmpi ne, %13, %c0_i32_8 : i32
    scf.if %14 {
      %c0_9 = arith.constant 0 : index
      %c0_10 = arith.constant 0 : index
      %15 = vector.load %arg4[%c0_9, %c0_10] : memref<128x1xf32, #tpu.memory_space<vmem>>, vector<128x1xf32>
      %c0_11 = arith.constant 0 : index
      %c0_12 = arith.constant 0 : index
      %16 = vector.load %arg7[%c0_11, %c0_12] : memref<128x4xf32, #tpu.memory_space<vmem>>, vector<128x4xf32>
      %17 = vector.broadcast %15 : vector<128x1xf32> to vector<128x4xf32>
      %18 = arith.mulf %17, %16 : vector<128x4xf32>
      %c0_13 = arith.constant 0 : index
      %c0_14 = arith.constant 0 : index
      %19 = vector.load %arg5[%c0_13, %c0_14] : memref<1x4xf32, #tpu.memory_space<vmem>>, vector<1x4xf32>
      %20 = vector.broadcast %19 : vector<1x4xf32> to vector<128x4xf32>
      %21 = arith.addf %18, %20 : vector<128x4xf32>
      %22 = arith.truncf %21 : vector<128x4xf32> to vector<128x4xbf16>
      %c0_15 = arith.constant 0 : index
      %c0_16 = arith.constant 0 : index
      %23 = vector.load %arg6[%c0_15, %c0_16] : memref<128x4xbf16, #tpu.memory_space<vmem>>, vector<128x4xbf16>
      tpu.vector_store %arg6[%c0_15, %c0_16], %22 {strides = array<i32>} : memref<128x4xbf16, #tpu.memory_space<vmem>>, vector<128x4xbf16>,
    } else {
    }
    return
  }
  func.func @transform_0(%arg0: i32, %arg1: i32) -> (i32, i32) {
    %c0_i32 = arith.constant 0 : i32
    return %arg0, %arg1 : i32, i32
  }
  func.func @transform_1(%arg0: i32, %arg1: i32) -> (i32, i32) {
    %c0_i32 = arith.constant 0 : i32
    %c0_i32_0 = arith.constant 0 : i32
    %c0_i32_1 = arith.constant 0 : i32
    return %c0_i32, %c0_i32_0 : i32, i32
  }
  func.func @transform_2(%arg0: i32, %arg1: i32) -> (i32, i32) {
    %c0_i32 = arith.constant 0 : i32
    %c0_i32_0 = arith.constant 0 : i32
    return %arg0, %c0_i32 : i32, i32
  }
  func.func @transform_3(%arg0: i32, %arg1: i32) -> (i32, i32) {
    %c0_i32 = arith.constant 0 : i32
    %c0_i32_0 = arith.constant 0 : i32
    %c0_i32_1 = arith.constant 0 : i32
    return %c0_i32, %c0_i32_0 : i32, i32
  }
  func.func @transform_4(%arg0: i32, %arg1: i32) -> (i32, i32) {
    %c0_i32 = arith.constant 0 : i32
    %c0_i32_0 = arith.constant 0 : i32
    return %arg0, %c0_i32 : i32, i32
  }
}

module attributes {stable_mosaic.version = 11 : i64} {
  func.func @_decoder_kernel(%arg0: i32, %arg1: i32, %arg2: memref<128x4xbf16, #tpu.memory_space<vmem>>, %arg3: memref<128x4xbf16, #tpu.memory_space<vmem>>, %arg4: memref<128x128xbf16, #tpu.memory_space<vmem>>) attributes {dimension_semantics = [#tpu.dimension_semantics<parallel>, #tpu.dimension_semantics<parallel>], iteration_bounds = array<i64: 1, 1>, scalar_prefetch = 0 : i64, scratch_operands = 0 : i64, tpu.core_type = #tpu.core_type<tc>, window_params = [{transform_indices = @transform_0, window_bounds = array<i64: 128, 4>}, {transform_indices = @transform_1, window_bounds = array<i64: 128, 4>}, {transform_indices = @transform_2, window_bounds = array<i64: 128, 128>}]} {
    %c0 = arith.constant 0 : index
    %c0_0 = arith.constant 0 : index
    %0 = vector.load %arg2[%c0, %c0_0] : memref<128x4xbf16, #tpu.memory_space<vmem>>, vector<128x4xbf16>
    %c0_1 = arith.constant 0 : index
    %c0_2 = arith.constant 0 : index
    %1 = vector.load %arg3[%c0_1, %c0_2] : memref<128x4xbf16, #tpu.memory_space<vmem>>, vector<128x4xbf16>
    %cst = arith.constant dense<0.000000e+00> : vector<128x128xf32>
    %2 = tpu.matmul %0, %1, %cst {dimension_numbers = #tpu.dot_dimension_numbers<[1], [1], [0], [0], [0, 0, 1, 0], [], []>} : vector<128x4xbf16>, vector<128x4xbf16>, vector<128x128xf32> -> vector<128x128xf32>
    %3 = arith.negf %2 : vector<128x128xf32>
    %4 = math.exp %3 : vector<128x128xf32>
    %cst_3 = arith.constant 1.000000e+00 : f32
    %5 = vector.broadcast %cst_3 : f32 to vector<128x128xf32>
    %6 = arith.addf %5, %4 : vector<128x128xf32>
    %7 = arith.divf %5, %6 : vector<128x128xf32>
    %8 = arith.truncf %7 : vector<128x128xf32> to vector<128x128xbf16>
    %c0_4 = arith.constant 0 : index
    %c0_5 = arith.constant 0 : index
    %9 = vector.load %arg4[%c0_4, %c0_5] : memref<128x128xbf16, #tpu.memory_space<vmem>>, vector<128x128xbf16>
    tpu.vector_store %arg4[%c0_4, %c0_5], %8 {strides = array<i32>} : memref<128x128xbf16, #tpu.memory_space<vmem>>, vector<128x128xbf16>,
    return
  }
  func.func @transform_0(%arg0: i32, %arg1: i32) -> (i32, i32) {
    %c0_i32 = arith.constant 0 : i32
    %c0_i32_0 = arith.constant 0 : i32
    return %arg0, %c0_i32 : i32, i32
  }
  func.func @transform_1(%arg0: i32, %arg1: i32) -> (i32, i32) {
    %c0_i32 = arith.constant 0 : i32
    %c0_i32_0 = arith.constant 0 : i32
    return %arg1, %c0_i32 : i32, i32
  }
  func.func @transform_2(%arg0: i32, %arg1: i32) -> (i32, i32) {
    %c0_i32 = arith.constant 0 : i32
    return %arg0, %arg1 : i32, i32
  }
}

</mosaic_0001>

<bundles_post_ra>
// kernel: vgae_forward.4
= control target key start
LH: loop header
LB: loop body
LE: loop exit
PB: predicated region body
PF: predicated region fallthrough
CT: control target
= control target key end

     0   :  { %v692_v1 = vmov 0   ;;  %vm22_vm0 = vcmask 31744   ;;  %v693_v31 = vmov 0.0   ;;  %vm536_vm1 = vcmask 27648   ;;  %s962_s1 = inlined_call_operand.vmem [shape: bf16[128,4], index: 1, kind: input, shape index: {}]   ;;  %s963_s0 = inlined_call_operand.vmem [shape: bf16[128,128], index: 0, kind: input, shape index: {}]   ;;  %s964_s2 = inlined_call_operand.vmem [shape: f32[128,1], index: 2, kind: input, shape index: {}]   ;;  %s965_s3 = inlined_call_operand.vmem [shape: f32[1,4], index: 3, kind: input, shape index: {}]   ;;  %s966_s4 = inlined_call_operand.vmem [shape: bf16[128,4], index: 4, kind: output, shape index: {}]  }
   0x1   :  { %v676_v0 = vld [vmem:[%s962_s1 + $0x38] sm:$0xff]   ;;  %675 = vset.pattern.permute.xlu1 %v692_v1  ;;  %674 = vset.pattern.permute.xlu0 %v692_v1  ;;  %v677_v2 = vld [vmem:[%s962_s1 + $0x30] sm:$0xff]   ;;  %v678_v3 = vld [vmem:[%s962_s1 + $0x28] sm:$0xff]   ;;  %25 = vst.msk [vmem:[#allocation2 + $0x10] sm:$0xff] %vm22_vm0, %v693_v31 }
   0x2   :  { %624 = vmatprep.subr.bf16.mxu0 %v676_v0  ;;  %656 = vmatprep.subr.bf16.mxu1 %v676_v0  ;;  %v679_v4 = vld [vmem:[%s962_s1 + $0x20] sm:$0xff]   ;;  %v680_v7 = vld [vmem:[%s962_s1 + $0x18] sm:$0xff]   ;;  %v681_v8 = vld [vmem:[%s962_s1 + $0x10] sm:$0xff]   ;;  %23 = vst.msk [vmem:[#allocation2] sm:$0xff] %vm22_vm0, %v693_v31 }
   0x3   :  { %625 = vmatpush3.bf16.msra.mxu0 %v676_v0  ;;  %664 = vmatpush3.bf16.msra.mxu1 %v676_v0  ;;  %v684_v5 = vld [vmem:[%s963_s0] sm:$0xff]   ;;  %v323_v9 = vld [vmem:[%s964_s2 + $0x10] sm:$0xff]  ;;  %v324_v11 = vld [vmem:[%s964_s2 + $0x18] sm:$0xff]  ;;  %24 = vst.msk [vmem:[#allocation2 + $0x8] sm:$0xff] %vm22_vm0, %v693_v31 }
   0x4   :  { %626 = vmatprep.subr.bf16.mxu0 %v677_v2  ;;  %657 = vmatprep.subr.bf16.mxu1 %v677_v2  ;;  %v685_v6 = vld [vmem:[%s963_s0 + $0x20] sm:$0xff]   ;;  %v322_v12 = vld [vmem:[%s964_s2 + $0x8] sm:$0xff]  ;;  %v328_v17 = vld [vmem:[%s964_s2 + $0x38] sm:$0xff]  ;;  %26 = vst.msk [vmem:[#allocation2 + $0x18] sm:$0xff] %vm22_vm0, %v693_v31 }
   0x5   :  { %640 = vmatprep.mubr.bf16.mxu0 %v684_v5  ;;  %648 = vmatprep.mubr.bf16.mxu1 %v685_v6  ;;  %v321_v10 = vld [vmem:[%s964_s2] sm:$0xff]  ;;  %v682_v13 = vld [vmem:[%s962_s1 + $0x8] sm:$0xff]   ;;  %v327_v18 = vld [vmem:[%s964_s2 + $0x30] sm:$0xff]  ;;  %27 = vst.msk [vmem:[#allocation2 + $0x20] sm:$0xff] %vm22_vm0, %v693_v31 }
   0x6   :  { %365 = vperm.xlu1 %675, %v323_v9   ;;  %355 = vperm.xlu0 %674, %v321_v10   ;;  %v326_v14 = vld [vmem:[%s964_s2 + $0x28] sm:$0xff]  ;;  %v325_v15 = vld [vmem:[%s964_s2 + $0x20] sm:$0xff]  ;;  %v688_v23 = vld [vmem:[%s963_s0 + $0x10] sm:$0xff]   ;;  %28 = vst.msk [vmem:[#allocation2 + $0x28] sm:$0xff] %vm22_vm0, %v693_v31 }
   0x7   :  { %627 = vmatpush3.bf16.msra.mxu0 %v677_v2  ;;  %665 = vmatpush3.bf16.msra.mxu1 %v677_v2  ;;  %v683_v16 = vld [vmem:[%s962_s1] sm:$0xff]   ;;  %v686_v19 = vld [vmem:[%s963_s0 + $0x8] sm:$0xff]   ;;  %v689_v24 = vld [vmem:[%s963_s0 + $0x30] sm:$0xff]   ;;  %29 = vst.msk [vmem:[#allocation2 + $0x30] sm:$0xff] %vm22_vm0, %v693_v31 }
   0x8   :  { %628 = vmatprep.subr.bf16.mxu0 %v678_v3  ;;  %658 = vmatprep.subr.bf16.mxu1 %v678_v3  ;;  %v687_v20 = vld [vmem:[%s963_s0 + $0x28] sm:$0xff]   ;;  %v329_v22 = vld [vmem:[%s964_s2 + $0x40] sm:$0xff]  ;;  %v332_v25 = vld [vmem:[%s964_s2 + $0x58] sm:$0xff]  ;;  %30 = vst.msk [vmem:[#allocation2 + $0x38] sm:$0xff] %vm22_vm0, %v693_v31 }
   0x9   :  { %v330_v21 = vld [vmem:[%s964_s2 + $0x48] sm:$0xff]  ;;  %v331_v26 = vld [vmem:[%s964_s2 + $0x50] sm:$0xff]  ;;  %v690_v27 = vld [vmem:[%s963_s0 + $0x18] sm:$0xff]   ;;  %31 = vst.msk [vmem:[#allocation2 + $0x40] sm:$0xff] %vm22_vm0, %v693_v31 }
   0xa   :  { %370 = vperm.xlu1 %675, %v324_v11   ;;  %360 = vperm.xlu0 %674, %v322_v12   ;;  %v691_v28 = vld [vmem:[%s963_s0 + $0x38] sm:$0xff]   ;;  %v334_v29 = vld [vmem:[%s964_s2 + $0x68] sm:$0xff]  ;;  %v333_v30 = vld [vmem:[%s964_s2 + $0x60] sm:$0xff]  ;;  %32 = vst.msk [vmem:[#allocation2 + $0x48] sm:$0xff] %vm22_vm0, %v693_v31 }
   0xb   :  { %629 = vmatpush3.bf16.msra.mxu0 %v678_v3  ;;  %666 = vmatpush3.bf16.msra.mxu1 %v678_v3  ;;  %33 = vst.msk [vmem:[#allocation2 + $0x50] sm:$0xff] %vm22_vm0, %v693_v31  ;;  %34 = vst.msk [vmem:[#allocation2 + $0x58] sm:$0xff] %vm22_vm0, %v693_v31  ;;  %v336_v32 = vld [vmem:[%s964_s2 + $0x78] sm:$0xff]  ;;  %v335_v33 = vld [vmem:[%s964_s2 + $0x70] sm:$0xff] }
   0xc   :  { %630 = vmatprep.subr.bf16.mxu0 %v679_v4  ;;  %659 = vmatprep.subr.bf16.mxu1 %v679_v4  ;;  %35 = vst.msk [vmem:[#allocation2 + $0x60] sm:$0xff] %vm22_vm0, %v693_v31  ;;  %36 = vst.msk [vmem:[#allocation2 + $0x68] sm:$0xff] %vm22_vm0, %v693_v31  ;;  %v42_v41 = vld [vmem:[#allocation2 + $0x10] sm:$0xff]  ;;  %v40_v47 = vld [vmem:[#allocation2] sm:$0xff] }
   0xd   :  { %37 = vst.msk [vmem:[#allocation2 + $0x70] sm:$0xff] %vm22_vm0, %v693_v31  ;;  %38 = vst.msk [vmem:[#allocation2 + $0x78] sm:$0xff] %vm22_vm0, %v693_v31  ;;  %v43_v53 = vld [vmem:[#allocation2 + $0x18] sm:$0xff]  ;;  %v41_v59 = vld [vmem:[#allocation2 + $0x8] sm:$0xff] }
   0xe   :  { %380 = vperm.xlu1 %675, %v326_v14   ;;  %375 = vperm.xlu0 %674, %v325_v15   ;;  %v46_v3 = vld [vmem:[#allocation2 + $0x30] sm:$0xff]  ;;  %v44_v9 = vld [vmem:[#allocation2 + $0x20] sm:$0xff]  ;;  %v860_v14 = vld [vmem:[%s965_s3] ss:$0 sm:$0xff] }
   0xf   :  { %631 = vmatpush3.bf16.msra.mxu0 %v679_v4  ;;  %667 = vmatpush3.bf16.msra.mxu1 %v679_v4 }
  0x10   :  { %632 = vmatprep.subr.bf16.mxu0 %v680_v7  ;;  %660 = vmatprep.subr.bf16.mxu1 %v680_v7  ;;  %v48_v48 = vld [vmem:[#allocation2 + $0x40] sm:$0xff] }
  0x11   :  { %v49_v60 = vld [vmem:[#allocation2 + $0x48] sm:$0xff] }
  0x12   :  { %390 = vperm.xlu1 %675, %v328_v17   ;;  %385 = vperm.xlu0 %674, %v327_v18   ;;  %v50_v42 = vld [vmem:[#allocation2 + $0x50] sm:$0xff]  ;;  %v51_v54 = vld [vmem:[#allocation2 + $0x58] sm:$0xff] }
  0x13   :  { %633 = vmatpush3.bf16.msra.mxu0 %v680_v7  ;;  %668 = vmatpush3.bf16.msra.mxu1 %v680_v7  ;;  %v52_v10 = vld [vmem:[#allocation2 + $0x60] sm:$0xff] }
  0x14   :  { %634 = vmatprep.subr.bf16.mxu0 %v681_v8  ;;  %661 = vmatprep.subr.bf16.mxu1 %v681_v8  ;;  %v54_v4 = vld [vmem:[#allocation2 + $0x70] sm:$0xff] }
  0x16   :  { %400 = vperm.xlu1 %675, %v330_v21   ;;  %395 = vperm.xlu0 %674, %v329_v22  }
  0x17   :  { %635 = vmatpush3.bf16.msra.mxu0 %v681_v8  ;;  %669 = vmatpush3.bf16.msra.mxu1 %v681_v8 }
  0x18   :  { %636 = vmatprep.subr.bf16.mxu0 %v682_v13  ;;  %662 = vmatprep.subr.bf16.mxu1 %v682_v13 }
  0x1a   :  { %410 = vperm.xlu1 %675, %v332_v25   ;;  %405 = vperm.xlu0 %674, %v331_v26   ;;  %v55_v25 = vld [vmem:[#allocation2 + $0x78] sm:$0xff] }
  0x1b   :  { %637 = vmatpush3.bf16.msra.mxu0 %v682_v13  ;;  %670 = vmatpush3.bf16.msra.mxu1 %v682_v13 }
  0x1c   :  { %638 = vmatprep.subr.bf16.mxu0 %v683_v16  ;;  %663 = vmatprep.subr.bf16.mxu1 %v683_v16 }
  0x1e   :  { %420 = vperm.xlu1 %675, %v334_v29   ;;  %415 = vperm.xlu0 %674, %v333_v30  }
  0x1f   :  { %639 = vmatpush3.bf16.msra.mxu0 %v683_v16  ;;  %671 = vmatpush3.bf16.msra.mxu1 %v683_v16 }
  0x22   :  { %641 = vmatmul.mubr.bf16.vlgmr.msra.gmra.mxu0 %v686_v19  ;;  %649 = vmatmul.mubr.bf16.vlgmr.msra.gmra.mxu1 %v687_v20 }
  0x23   :  { %644 = vmatprep.mubr.bf16.mxu0 %v688_v23  ;;  %652 = vmatprep.mubr.bf16.mxu1 %v689_v24  ;;  %v47_v24 = vld [vmem:[#allocation2 + $0x38] sm:$0xff] }
  0x24   :  { %430 = vperm.xlu1 %675, %v336_v32   ;;  %425 = vperm.xlu0 %674, %v335_v33  }
  0x2a   :  { %645 = vmatmul.mubr.bf16.gmra.mxu0 %v690_v27  ;;  %653 = vmatmul.mubr.bf16.gmra.mxu1 %v691_v28 }
  0x81   :  { %v831_v34 = vpop.permute.xlu0 %355  ;;  %v366_v35 = vpop.permute.xlu1 %365 }
  0x85   :  { %v833_v36 = vpop.permute.xlu0 %360  ;;  %v835_v37 = vpop.permute.xlu1 %370 }
  0x89   :  { %v837_v38 = vpop.permute.xlu0 %375  ;;  %v839_v39 = vpop.permute.xlu1 %380 }
  0x8d   :  { %v841_v40 = vpop.permute.xlu0 %385  ;;  %v843_v43 = vpop.permute.xlu1 %390 }
  0x91   :  { %v845_v44 = vpop.permute.xlu0 %395  ;;  %v849_v61 = vpop.permute.xlu1 %400 }
  0x95   :  { %v406_v62 = vpop.permute.xlu0 %405  ;;  %v411_v18 = vpop.permute.xlu1 %410 }
  0x99   :  { %v862_v19 = vpop.permute.xlu0 %415 }
  0xe2   :  { %v642_v45 = vpop.f32.mrf.mxu0  ;;  %v650_v46 = vpop.f32.mrf.mxu1 }
  0xe3   :  { %v287_v49 = vadd.f32 %v642_v45, %v42_v41  ;;  %v295_v50 = vadd.f32 %v650_v46, %v50_v42  ;;  %v53_v41 = vld [vmem:[#allocation2 + $0x68] sm:$0xff] }
  0xe4   :  { %v222_v51 = vpop.f32.mrf.mxu0  ;;  %v254_v52 = vpop.f32.mrf.mxu1 }
  0xe5   :  { %304 = vst.msk [vmem:[#allocation2 + $0x10] sm:$0xff] %vm22_vm0, %v287_v49  ;;  %312 = vst.msk [vmem:[#allocation2 + $0x50] sm:$0xff] %vm22_vm0, %v295_v50  ;;  %v285_v55 = vadd.f32 %v222_v51, %v40_v47  ;;  %v293_v56 = vadd.f32 %v254_v52, %v48_v48 }
  0xe6   :  { %v643_v57 = vpop.f32.mrf.mxu0  ;;  %v651_v58 = vpop.f32.mrf.mxu1 }
  0xe7   :  { %302 = vst.msk [vmem:[#allocation2] sm:$0xff] %vm22_vm0, %v285_v55  ;;  %310 = vst.msk [vmem:[#allocation2 + $0x40] sm:$0xff] %vm22_vm0, %v293_v56  ;;  %v288_v63 = vadd.f32 %v643_v57, %v43_v53  ;;  %v296_v0 = vadd.f32 %v651_v58, %v51_v54  ;;  %v421_v58 = vpop.permute.xlu1 %420 }
  0xe8   :  { %v225_v1 = vpop.f32.mrf.mxu0  ;;  %v257_v2 = vpop.f32.mrf.mxu1 }
  0xe9   :  { %305 = vst.msk [vmem:[#allocation2 + $0x18] sm:$0xff] %vm22_vm0, %v288_v63  ;;  %313 = vst.msk [vmem:[#allocation2 + $0x58] sm:$0xff] %vm22_vm0, %v296_v0  ;;  %v286_v5 = vadd.f32 %v225_v1, %v41_v59  ;;  %v294_v6 = vadd.f32 %v257_v2, %v49_v60  ;;  %v426_v63 = vpop.permute.xlu0 %425 }
  0xea   :  { %v646_v7 = vpop.f32.mrf.mxu0  ;;  %v654_v8 = vpop.f32.mrf.mxu1 }
  0xeb   :  { %303 = vst.msk [vmem:[#allocation2 + $0x8] sm:$0xff] %vm22_vm0, %v286_v5  ;;  %311 = vst.msk [vmem:[#allocation2 + $0x48] sm:$0xff] %vm22_vm0, %v294_v6  ;;  %v291_v11 = vadd.f32 %v646_v7, %v46_v3  ;;  %v299_v12 = vadd.f32 %v654_v8, %v54_v4 }
  0xec   :  { %v339_v13 = vld [vmem:[#allocation2 + $0x10] sm:$0xff]  ;;  %v238_v16 = vpop.f32.mrf.mxu0  ;;  %v270_v17 = vpop.f32.mrf.mxu1 }
  0xed   :  { %v347_v15 = vld [vmem:[#allocation2 + $0x50] sm:$0xff]  ;;  %v435_v20 = vmul.f32 %v366_v35, %v339_v13  ;;  %308 = vst.msk [vmem:[#allocation2 + $0x30] sm:$0xff] %vm22_vm0, %v291_v11  ;;  %316 = vst.msk [vmem:[#allocation2 + $0x70] sm:$0xff] %vm22_vm0, %v299_v12  ;;  %v289_v22 = vadd.f32 %v238_v16, %v44_v9  ;;  %v297_v23 = vadd.f32 %v270_v17, %v52_v10  ;;  %v45_v35 = vld [vmem:[#allocation2 + $0x28] sm:$0xff]  ;;  %v431_v16 = vpop.permute.xlu1 %430 }
  0xee   :  { %v443_v21 = vmul.f32 %v406_v62, %v347_v15  ;;  %v337_v26 = vld [vmem:[#allocation2] sm:$0xff]  ;;  %v647_v28 = vpop.f32.mrf.mxu0  ;;  %v655_v29 = vpop.f32.mrf.mxu1 }
  0xef   :  { %v345_v27 = vld [vmem:[#allocation2 + $0x40] sm:$0xff]  ;;  %v458_v30 = vadd.f32 %v860_v14, %v435_v20  ;;  %v433_v32 = vmul.f32 %v831_v34, %v337_v26  ;;  %306 = vst.msk [vmem:[#allocation2 + $0x20] sm:$0xff] %vm22_vm0, %v289_v22  ;;  %314 = vst.msk [vmem:[#allocation2 + $0x60] sm:$0xff] %vm22_vm0, %v297_v23  ;;  %v292_v46 = vadd.f32 %v647_v28, %v47_v24 }
  0xf0   :  { %v466_v31 = vadd.f32 %v860_v14, %v443_v21  ;;  %v441_v33 = vmul.f32 %v845_v44, %v345_v27  ;;  %v340_v42 = vld [vmem:[#allocation2 + $0x18] sm:$0xff]  ;;  %v300_v47 = vadd.f32 %v655_v29, %v55_v25  ;;  %v241_v48 = vpop.f32.mrf.mxu0  ;;  %v273_v49 = vpop.f32.mrf.mxu1 }
  0xf1   :  { %v348_v45 = vld [vmem:[#allocation2 + $0x58] sm:$0xff]  ;;  %v594_v50 = vpack.c.bf16 %v458_v30, %v458_v30  ;;  %v456_v52 = vadd.f32 %v860_v14, %v433_v32  ;;  %v436_v44 = vmul.f32 %v835_v37, %v340_v42  ;;  %309 = vst.msk [vmem:[#allocation2 + $0x38] sm:$0xff] %vm22_vm0, %v292_v46  ;;  %v290_v56 = vadd.f32 %v241_v48, %v45_v35 }
  0xf2   :  { %v602_v51 = vpack.c.bf16 %v466_v31, %v466_v31  ;;  %v464_v34 = vadd.f32 %v860_v14, %v441_v33  ;;  %v444_v53 = vmul.f32 %v411_v18, %v348_v45  ;;  %v338_v54 = vld [vmem:[#allocation2 + $0x8] sm:$0xff]  ;;  %317 = vst.msk [vmem:[#allocation2 + $0x78] sm:$0xff] %vm22_vm0, %v300_v47  ;;  %v298_v57 = vadd.f32 %v273_v49, %v53_v41 }
  0xf3   :  { %v346_v55 = vld [vmem:[#allocation2 + $0x48] sm:$0xff]  ;;  %539 = vst.msk [vmem:[%s966_s4 + $0x8] sm:$0xf] %vm536_vm1, %v594_v50  ;;  %v592_v37 = vpack.c.bf16 %v456_v52, %v456_v52  ;;  %v434_v60 = vmul.f32 %v833_v36, %v338_v54  ;;  %v459_v0 = vadd.f32 %v860_v14, %v436_v44 }
  0xf4   :  { %547 = vst.msk [vmem:[%s966_s4 + $0x28] sm:$0xf] %vm536_vm1, %v602_v51  ;;  %v600_v59 = vpack.c.bf16 %v464_v34, %v464_v34  ;;  %v442_v62 = vmul.f32 %v849_v61, %v346_v55  ;;  %v467_v1 = vadd.f32 %v860_v14, %v444_v53  ;;  %v343_v2 = vld [vmem:[#allocation2 + $0x30] sm:$0xff] }
  0xf5   :  { %v351_v3 = vld [vmem:[#allocation2 + $0x70] sm:$0xff]  ;;  %307 = vst.msk [vmem:[#allocation2 + $0x28] sm:$0xff] %vm22_vm0, %v290_v56  ;;  %315 = vst.msk [vmem:[#allocation2 + $0x68] sm:$0xff] %vm22_vm0, %v298_v57  ;;  %v457_v36 = vadd.f32 %v860_v14, %v434_v60  ;;  %v439_v4 = vmul.f32 %v841_v40, %v343_v2  ;;  %v595_v6 = vpack.c.bf16 %v459_v0, %v459_v0 }
  0xf6   :  { %537 = vst.msk [vmem:[%s966_s4] sm:$0xf] %vm536_vm1, %v592_v37  ;;  %545 = vst.msk [vmem:[%s966_s4 + $0x20] sm:$0xf] %vm536_vm1, %v600_v59  ;;  %v465_v61 = vadd.f32 %v860_v14, %v442_v62  ;;  %v447_v5 = vmul.f32 %v426_v63, %v351_v3  ;;  %v603_v7 = vpack.c.bf16 %v467_v1, %v467_v1  ;;  %v341_v8 = vld [vmem:[#allocation2 + $0x20] sm:$0xff] }
  0xf7   :  { %v349_v9 = vld [vmem:[#allocation2 + $0x60] sm:$0xff]  ;;  %v593_v10 = vpack.c.bf16 %v457_v36, %v457_v36  ;;  %v462_v12 = vadd.f32 %v860_v14, %v439_v4  ;;  %540 = vst.msk [vmem:[%s966_s4 + $0xc] sm:$0xf] %vm536_vm1, %v595_v6  ;;  %v437_v40 = vmul.f32 %v837_v38, %v341_v8 }
  0xf8   :  { %v601_v11 = vpack.c.bf16 %v465_v61, %v465_v61  ;;  %v470_v13 = vadd.f32 %v860_v14, %v447_v5  ;;  %548 = vst.msk [vmem:[%s966_s4 + $0x2c] sm:$0xf] %vm536_vm1, %v603_v7  ;;  %v445_v15 = vmul.f32 %v862_v19, %v349_v9  ;;  %v344_v20 = vld [vmem:[#allocation2 + $0x38] sm:$0xff] }
  0xf9   :  { %538 = vst.msk [vmem:[%s966_s4 + $0x4] sm:$0xf] %vm536_vm1, %v593_v10  ;;  %v598_v17 = vpack.c.bf16 %v462_v12, %v462_v12  ;;  %v352_v21 = vld [vmem:[#allocation2 + $0x78] sm:$0xff]  ;;  %v460_v22 = vadd.f32 %v860_v14, %v437_v40  ;;  %v440_v19 = vmul.f32 %v843_v43, %v344_v20 }
  0xfa   :  { %546 = vst.msk [vmem:[%s966_s4 + $0x24] sm:$0xf] %vm536_vm1, %v601_v11  ;;  %v606_v18 = vpack.c.bf16 %v470_v13, %v470_v13  ;;  %v468_v38 = vadd.f32 %v860_v14, %v445_v15  ;;  %v448_v23 = vmul.f32 %v431_v16, %v352_v21 }
  0xfb   :  { %543 = vst.msk [vmem:[%s966_s4 + $0x18] sm:$0xf] %vm536_vm1, %v598_v17  ;;  %v596_v26 = vpack.c.bf16 %v460_v22, %v460_v22  ;;  %v463_v28 = vadd.f32 %v860_v14, %v440_v19 }
  0xfc   :  { %551 = vst.msk [vmem:[%s966_s4 + $0x38] sm:$0xf] %vm536_vm1, %v606_v18  ;;  %v342_v24 = vld [vmem:[#allocation2 + $0x28] sm:$0xff]  ;;  %v604_v27 = vpack.c.bf16 %v468_v38, %v468_v38  ;;  %v471_v29 = vadd.f32 %v860_v14, %v448_v23 }
  0xfd   :  { %v350_v25 = vld [vmem:[#allocation2 + $0x68] sm:$0xff]  ;;  %v438_v43 = vmul.f32 %v839_v39, %v342_v24  ;;  %541 = vst.msk [vmem:[%s966_s4 + $0x10] sm:$0xf] %vm536_vm1, %v596_v26  ;;  %v599_v31 = vpack.c.bf16 %v463_v28, %v463_v28 }
  0xfe   :  { %v446_v30 = vmul.f32 %v421_v58, %v350_v25  ;;  %549 = vst.msk [vmem:[%s966_s4 + $0x30] sm:$0xf] %vm536_vm1, %v604_v27  ;;  %v607_v32 = vpack.c.bf16 %v471_v29, %v471_v29 }
  0xff   :  { %v461_v33 = vadd.f32 %v860_v14, %v438_v43  ;;  %544 = vst.msk [vmem:[%s966_s4 + $0x1c] sm:$0xf] %vm536_vm1, %v599_v31 }
 0x100   :  { %v469_v35 = vadd.f32 %v860_v14, %v446_v30  ;;  %552 = vst.msk [vmem:[%s966_s4 + $0x3c] sm:$0xf] %vm536_vm1, %v607_v32 }
 0x101   :  { %v597_v39 = vpack.c.bf16 %v461_v33, %v461_v33 }
 0x102   :  { %v605_v41 = vpack.c.bf16 %v469_v35, %v469_v35 }
 0x103   :  { %542 = vst.msk [vmem:[%s966_s4 + $0x14] sm:$0xf] %vm536_vm1, %v597_v39 }
 0x104   :  { %550 = vst.msk [vmem:[%s966_s4 + $0x34] sm:$0xf] %vm536_vm1, %v605_v41 }

// kernel: vgae_forward.3
= control target key start
LH: loop header
LB: loop body
LE: loop exit
PB: predicated region body
PF: predicated region fallthrough
CT: control target
= control target key end

     0   :  { %v724_v1 = vmov 0   ;;  %vm22_vm0 = vcmask 64512   ;;  %v725_v31 = vmov 0.0   ;;  %vm568_vm1 = vcmask 60416   ;;  %s1012_s1 = inlined_call_operand.vmem [shape: bf16[128,8], index: 1, kind: input, shape index: {}]   ;;  %s1013_s0 = inlined_call_operand.vmem [shape: bf16[128,128], index: 0, kind: input, shape index: {}]   ;;  %s1014_s2 = inlined_call_operand.vmem [shape: f32[128,1], index: 2, kind: input, shape index: {}]   ;;  %s1015_s3 = inlined_call_operand.vmem [shape: f32[1,8], index: 3, kind: input, shape index: {}]   ;;  %s1016_s4 = inlined_call_operand.vmem [shape: bf16[128,8], index: 4, kind: output, shape index: {}]  }
   0x1   :  { %v708_v0 = vld [vmem:[%s1012_s1 + $0x38] sm:$0xff]   ;;  %707 = vset.pattern.permute.xlu1 %v724_v1  ;;  %706 = vset.pattern.permute.xlu0 %v724_v1  ;;  %v709_v2 = vld [vmem:[%s1012_s1 + $0x30] sm:$0xff]   ;;  %v710_v3 = vld [vmem:[%s1012_s1 + $0x28] sm:$0xff]   ;;  %25 = vst.msk [vmem:[#allocation2 + $0x10] sm:$0xff] %vm22_vm0, %v725_v31 }
   0x2   :  { %656 = vmatprep.subr.bf16.mxu0 %v708_v0  ;;  %688 = vmatprep.subr.bf16.mxu1 %v708_v0  ;;  %v711_v4 = vld [vmem:[%s1012_s1 + $0x20] sm:$0xff]   ;;  %v712_v7 = vld [vmem:[%s1012_s1 + $0x18] sm:$0xff]   ;;  %v713_v8 = vld [vmem:[%s1012_s1 + $0x10] sm:$0xff]   ;;  %23 = vst.msk [vmem:[#allocation2] sm:$0xff] %vm22_vm0, %v725_v31 }
   0x3   :  { %657 = vmatpush3.bf16.msra.mxu0 %v708_v0  ;;  %696 = vmatpush3.bf16.msra.mxu1 %v708_v0  ;;  %v716_v5 = vld [vmem:[%s1013_s0] sm:$0xff]   ;;  %v323_v9 = vld [vmem:[%s1014_s2 + $0x10] sm:$0xff]  ;;  %v324_v11 = vld [vmem:[%s1014_s2 + $0x18] sm:$0xff]  ;;  %24 = vst.msk [vmem:[#allocation2 + $0x8] sm:$0xff] %vm22_vm0, %v725_v31 }
   0x4   :  { %658 = vmatprep.subr.bf16.mxu0 %v709_v2  ;;  %689 = vmatprep.subr.bf16.mxu1 %v709_v2  ;;  %v717_v6 = vld [vmem:[%s1013_s0 + $0x20] sm:$0xff]   ;;  %v322_v12 = vld [vmem:[%s1014_s2 + $0x8] sm:$0xff]  ;;  %v328_v17 = vld [vmem:[%s1014_s2 + $0x38] sm:$0xff]  ;;  %26 = vst.msk [vmem:[#allocation2 + $0x18] sm:$0xff] %vm22_vm0, %v725_v31 }
   0x5   :  { %672 = vmatprep.mubr.bf16.mxu0 %v716_v5  ;;  %680 = vmatprep.mubr.bf16.mxu1 %v717_v6  ;;  %v321_v10 = vld [vmem:[%s1014_s2] sm:$0xff]  ;;  %v714_v13 = vld [vmem:[%s1012_s1 + $0x8] sm:$0xff]   ;;  %v327_v18 = vld [vmem:[%s1014_s2 + $0x30] sm:$0xff]  ;;  %27 = vst.msk [vmem:[#allocation2 + $0x20] sm:$0xff] %vm22_vm0, %v725_v31 }
   0x6   :  { %365 = vperm.xlu1 %707, %v323_v9   ;;  %355 = vperm.xlu0 %706, %v321_v10   ;;  %v326_v14 = vld [vmem:[%s1014_s2 + $0x28] sm:$0xff]  ;;  %v325_v15 = vld [vmem:[%s1014_s2 + $0x20] sm:$0xff]  ;;  %v720_v23 = vld [vmem:[%s1013_s0 + $0x10] sm:$0xff]   ;;  %28 = vst.msk [vmem:[#allocation2 + $0x28] sm:$0xff] %vm22_vm0, %v725_v31 }
   0x7   :  { %659 = vmatpush3.bf16.msra.mxu0 %v709_v2  ;;  %697 = vmatpush3.bf16.msra.mxu1 %v709_v2  ;;  %v715_v16 = vld [vmem:[%s1012_s1] sm:$0xff]   ;;  %v718_v19 = vld [vmem:[%s1013_s0 + $0x8] sm:$0xff]   ;;  %v721_v24 = vld [vmem:[%s1013_s0 + $0x30] sm:$0xff]   ;;  %29 = vst.msk [vmem:[#allocation2 + $0x30] sm:$0xff] %vm22_vm0, %v725_v31 }
   0x8   :  { %660 = vmatprep.subr.bf16.mxu0 %v710_v3  ;;  %690 = vmatprep.subr.bf16.mxu1 %v710_v3  ;;  %v719_v20 = vld [vmem:[%s1013_s0 + $0x28] sm:$0xff]   ;;  %v329_v22 = vld [vmem:[%s1014_s2 + $0x40] sm:$0xff]  ;;  %v332_v25 = vld [vmem:[%s1014_s2 + $0x58] sm:$0xff]  ;;  %30 = vst.msk [vmem:[#allocation2 + $0x38] sm:$0xff] %vm22_vm0, %v725_v31 }
   0x9   :  { %v330_v21 = vld [vmem:[%s1014_s2 + $0x48] sm:$0xff]  ;;  %v331_v26 = vld [vmem:[%s1014_s2 + $0x50] sm:$0xff]  ;;  %v722_v27 = vld [vmem:[%s1013_s0 + $0x18] sm:$0xff]   ;;  %31 = vst.msk [vmem:[#allocation2 + $0x40] sm:$0xff] %vm22_vm0, %v725_v31 }
   0xa   :  { %370 = vperm.xlu1 %707, %v324_v11   ;;  %360 = vperm.xlu0 %706, %v322_v12   ;;  %v723_v28 = vld [vmem:[%s1013_s0 + $0x38] sm:$0xff]   ;;  %v334_v29 = vld [vmem:[%s1014_s2 + $0x68] sm:$0xff]  ;;  %v333_v30 = vld [vmem:[%s1014_s2 + $0x60] sm:$0xff]  ;;  %32 = vst.msk [vmem:[#allocation2 + $0x48] sm:$0xff] %vm22_vm0, %v725_v31 }
   0xb   :  { %661 = vmatpush3.bf16.msra.mxu0 %v710_v3  ;;  %698 = vmatpush3.bf16.msra.mxu1 %v710_v3  ;;  %33 = vst.msk [vmem:[#allocation2 + $0x50] sm:$0xff] %vm22_vm0, %v725_v31  ;;  %34 = vst.msk [vmem:[#allocation2 + $0x58] sm:$0xff] %vm22_vm0, %v725_v31  ;;  %v336_v32 = vld [vmem:[%s1014_s2 + $0x78] sm:$0xff]  ;;  %v335_v33 = vld [vmem:[%s1014_s2 + $0x70] sm:$0xff] }
   0xc   :  { %662 = vmatprep.subr.bf16.mxu0 %v711_v4  ;;  %691 = vmatprep.subr.bf16.mxu1 %v711_v4  ;;  %35 = vst.msk [vmem:[#allocation2 + $0x60] sm:$0xff] %vm22_vm0, %v725_v31  ;;  %36 = vst.msk [vmem:[#allocation2 + $0x68] sm:$0xff] %vm22_vm0, %v725_v31  ;;  %v42_v41 = vld [vmem:[#allocation2 + $0x10] sm:$0xff]  ;;  %v40_v45 = vld [vmem:[#allocation2] sm:$0xff] }
   0xd   :  { %37 = vst.msk [vmem:[#allocation2 + $0x70] sm:$0xff] %vm22_vm0, %v725_v31  ;;  %38 = vst.msk [vmem:[#allocation2 + $0x78] sm:$0xff] %vm22_vm0, %v725_v31  ;;  %v43_v53 = vld [vmem:[#allocation2 + $0x18] sm:$0xff]  ;;  %v41_v59 = vld [vmem:[#allocation2 + $0x8] sm:$0xff] }
   0xe   :  { %380 = vperm.xlu1 %707, %v326_v14   ;;  %375 = vperm.xlu0 %706, %v325_v15   ;;  %v46_v1 = vld [vmem:[#allocation2 + $0x30] sm:$0xff]  ;;  %v44_v9 = vld [vmem:[#allocation2 + $0x20] sm:$0xff]  ;;  %v894_v14 = vld [vmem:[%s1015_s3] ss:$0 sm:$0xff] }
   0xf   :  { %663 = vmatpush3.bf16.msra.mxu0 %v711_v4  ;;  %699 = vmatpush3.bf16.msra.mxu1 %v711_v4 }
  0x10   :  { %664 = vmatprep.subr.bf16.mxu0 %v712_v7  ;;  %692 = vmatprep.subr.bf16.mxu1 %v712_v7  ;;  %v48_v46 = vld [vmem:[#allocation2 + $0x40] sm:$0xff] }
  0x11   :  { %v49_v60 = vld [vmem:[#allocation2 + $0x48] sm:$0xff] }
  0x12   :  { %390 = vperm.xlu1 %707, %v328_v17   ;;  %385 = vperm.xlu0 %706, %v327_v18   ;;  %v50_v42 = vld [vmem:[#allocation2 + $0x50] sm:$0xff]  ;;  %v51_v54 = vld [vmem:[#allocation2 + $0x58] sm:$0xff] }
  0x13   :  { %665 = vmatpush3.bf16.msra.mxu0 %v712_v7  ;;  %700 = vmatpush3.bf16.msra.mxu1 %v712_v7  ;;  %v52_v10 = vld [vmem:[#allocation2 + $0x60] sm:$0xff] }
  0x14   :  { %666 = vmatprep.subr.bf16.mxu0 %v713_v8  ;;  %693 = vmatprep.subr.bf16.mxu1 %v713_v8  ;;  %v54_v2 = vld [vmem:[#allocation2 + $0x70] sm:$0xff] }
  0x16   :  { %400 = vperm.xlu1 %707, %v330_v21   ;;  %395 = vperm.xlu0 %706, %v329_v22   ;;  %v47_v22 = vld [vmem:[#allocation2 + $0x38] sm:$0xff] }
  0x17   :  { %667 = vmatpush3.bf16.msra.mxu0 %v713_v8  ;;  %701 = vmatpush3.bf16.msra.mxu1 %v713_v8 }
  0x18   :  { %668 = vmatprep.subr.bf16.mxu0 %v714_v13  ;;  %694 = vmatprep.subr.bf16.mxu1 %v714_v13 }
  0x1a   :  { %410 = vperm.xlu1 %707, %v332_v25   ;;  %405 = vperm.xlu0 %706, %v331_v26  }
  0x1b   :  { %669 = vmatpush3.bf16.msra.mxu0 %v714_v13  ;;  %702 = vmatpush3.bf16.msra.mxu1 %v714_v13 }
  0x1c   :  { %670 = vmatprep.subr.bf16.mxu0 %v715_v16  ;;  %695 = vmatprep.subr.bf16.mxu1 %v715_v16 }
  0x1e   :  { %420 = vperm.xlu1 %707, %v334_v29   ;;  %415 = vperm.xlu0 %706, %v333_v30  }
  0x1f   :  { %671 = vmatpush3.bf16.msra.mxu0 %v715_v16  ;;  %703 = vmatpush3.bf16.msra.mxu1 %v715_v16 }
  0x22   :  { %673 = vmatmul.mubr.bf16.vlgmr.msra.gmra.mxu0 %v718_v19  ;;  %681 = vmatmul.mubr.bf16.vlgmr.msra.gmra.mxu1 %v719_v20 }
  0x23   :  { %676 = vmatprep.mubr.bf16.mxu0 %v720_v23  ;;  %684 = vmatprep.mubr.bf16.mxu1 %v721_v24  ;;  %v55_v23 = vld [vmem:[#allocation2 + $0x78] sm:$0xff] }
  0x24   :  { %430 = vperm.xlu1 %707, %v336_v32   ;;  %425 = vperm.xlu0 %706, %v335_v33  }
  0x2a   :  { %677 = vmatmul.mubr.bf16.gmra.mxu0 %v722_v27  ;;  %685 = vmatmul.mubr.bf16.gmra.mxu1 %v723_v28 }
  0x81   :  { %v863_v34 = vpop.permute.xlu0 %355  ;;  %v865_v35 = vpop.permute.xlu1 %365 }
  0x85   :  { %v867_v36 = vpop.permute.xlu0 %360  ;;  %v869_v37 = vpop.permute.xlu1 %370 }
  0x89   :  { %v871_v38 = vpop.permute.xlu0 %375  ;;  %v873_v39 = vpop.permute.xlu1 %380 }
  0x8d   :  { %v875_v40 = vpop.permute.xlu0 %385  ;;  %v877_v47 = vpop.permute.xlu1 %390 }
  0x91   :  { %v879_v48 = vpop.permute.xlu0 %395  ;;  %v885_v3 = vpop.permute.xlu1 %400 }
  0x95   :  { %v406_v4 = vpop.permute.xlu0 %405  ;;  %v411_v28 = vpop.permute.xlu1 %410 }
  0x99   :  { %v899_v29 = vpop.permute.xlu0 %415 }
  0xe2   :  { %v674_v43 = vpop.f32.mrf.mxu0  ;;  %v682_v44 = vpop.f32.mrf.mxu1 }
  0xe3   :  { %v287_v49 = vadd.f32 %v674_v43, %v42_v41  ;;  %v295_v50 = vadd.f32 %v682_v44, %v50_v42  ;;  %v45_v41 = vld [vmem:[#allocation2 + $0x28] sm:$0xff] }
  0xe4   :  { %v222_v51 = vpop.f32.mrf.mxu0  ;;  %v254_v52 = vpop.f32.mrf.mxu1  ;;  %v53_v42 = vld [vmem:[#allocation2 + $0x68] sm:$0xff] }
  0xe5   :  { %304 = vst.msk [vmem:[#allocation2 + $0x10] sm:$0xff] %vm22_vm0, %v287_v49  ;;  %312 = vst.msk [vmem:[#allocation2 + $0x50] sm:$0xff] %vm22_vm0, %v295_v50  ;;  %v285_v55 = vadd.f32 %v222_v51, %v40_v45  ;;  %v293_v56 = vadd.f32 %v254_v52, %v48_v46 }
  0xe6   :  { %v675_v57 = vpop.f32.mrf.mxu0  ;;  %v683_v58 = vpop.f32.mrf.mxu1 }
  0xe7   :  { %302 = vst.msk [vmem:[#allocation2] sm:$0xff] %vm22_vm0, %v285_v55  ;;  %310 = vst.msk [vmem:[#allocation2 + $0x40] sm:$0xff] %vm22_vm0, %v293_v56  ;;  %v288_v61 = vadd.f32 %v675_v57, %v43_v53  ;;  %v296_v62 = vadd.f32 %v683_v58, %v51_v54 }
  0xe8   :  { %v225_v63 = vpop.f32.mrf.mxu0  ;;  %v257_v0 = vpop.f32.mrf.mxu1 }
  0xe9   :  { %305 = vst.msk [vmem:[#allocation2 + $0x18] sm:$0xff] %vm22_vm0, %v288_v61  ;;  %313 = vst.msk [vmem:[#allocation2 + $0x58] sm:$0xff] %vm22_vm0, %v296_v62  ;;  %v286_v5 = vadd.f32 %v225_v63, %v41_v59  ;;  %v294_v6 = vadd.f32 %v257_v0, %v49_v60 }
  0xea   :  { %v678_v7 = vpop.f32.mrf.mxu0  ;;  %v686_v8 = vpop.f32.mrf.mxu1 }
  0xeb   :  { %303 = vst.msk [vmem:[#allocation2 + $0x8] sm:$0xff] %vm22_vm0, %v286_v5  ;;  %311 = vst.msk [vmem:[#allocation2 + $0x48] sm:$0xff] %vm22_vm0, %v294_v6  ;;  %v291_v11 = vadd.f32 %v678_v7, %v46_v1  ;;  %v299_v12 = vadd.f32 %v686_v8, %v54_v2 }
  0xec   :  { %v339_v13 = vld [vmem:[#allocation2 + $0x10] sm:$0xff]  ;;  %v238_v16 = vpop.f32.mrf.mxu0  ;;  %v270_v17 = vpop.f32.mrf.mxu1 }
  0xed   :  { %v347_v15 = vld [vmem:[#allocation2 + $0x50] sm:$0xff]  ;;  %v435_v18 = vmul.f32 %v865_v35, %v339_v13  ;;  %308 = vst.msk [vmem:[#allocation2 + $0x30] sm:$0xff] %vm22_vm0, %v291_v11  ;;  %316 = vst.msk [vmem:[#allocation2 + $0x70] sm:$0xff] %vm22_vm0, %v299_v12  ;;  %v289_v20 = vadd.f32 %v238_v16, %v44_v9  ;;  %v297_v21 = vadd.f32 %v270_v17, %v52_v10  ;;  %v919_v9 = vpop.permute.xlu1 %420  ;;  %v426_v12 = vpop.permute.xlu0 %425 }
  0xee   :  { %v443_v19 = vmul.f32 %v406_v4, %v347_v15  ;;  %v337_v24 = vld [vmem:[#allocation2] sm:$0xff]  ;;  %v679_v26 = vpop.f32.mrf.mxu0  ;;  %v687_v27 = vpop.f32.mrf.mxu1 }
  0xef   :  { %v345_v25 = vld [vmem:[#allocation2 + $0x40] sm:$0xff]  ;;  %v458_v30 = vadd.f32 %v894_v14, %v435_v18  ;;  %v433_v32 = vmul.f32 %v863_v34, %v337_v24  ;;  %306 = vst.msk [vmem:[#allocation2 + $0x20] sm:$0xff] %vm22_vm0, %v289_v20  ;;  %314 = vst.msk [vmem:[#allocation2 + $0x60] sm:$0xff] %vm22_vm0, %v297_v21  ;;  %v292_v45 = vadd.f32 %v679_v26, %v47_v22 }
  0xf0   :  { %v466_v31 = vadd.f32 %v894_v14, %v443_v19  ;;  %v441_v33 = vmul.f32 %v879_v48, %v345_v25  ;;  %v340_v43 = vld [vmem:[#allocation2 + $0x18] sm:$0xff]  ;;  %v300_v46 = vadd.f32 %v687_v27, %v55_v23  ;;  %v241_v49 = vpop.f32.mrf.mxu0  ;;  %v273_v50 = vpop.f32.mrf.mxu1 }
  0xf1   :  { %v348_v44 = vld [vmem:[#allocation2 + $0x58] sm:$0xff]  ;;  %v474_v51 = vmax.f32 %v458_v30, 0.0  ;;  %v456_v53 = vadd.f32 %v894_v14, %v433_v32  ;;  %v436_v55 = vmul.f32 %v869_v37, %v340_v43  ;;  %309 = vst.msk [vmem:[#allocation2 + $0x38] sm:$0xff] %vm22_vm0, %v292_v45  ;;  %v290_v59 = vadd.f32 %v241_v49, %v45_v41  ;;  %v431_v43 = vpop.permute.xlu1 %430 }
  0xf2   :  { %v482_v52 = vmax.f32 %v466_v31, 0.0  ;;  %v464_v54 = vadd.f32 %v894_v14, %v441_v33  ;;  %v444_v56 = vmul.f32 %v411_v28, %v348_v44  ;;  %v338_v57 = vld [vmem:[#allocation2 + $0x8] sm:$0xff]  ;;  %317 = vst.msk [vmem:[#allocation2 + $0x78] sm:$0xff] %vm22_vm0, %v300_v46  ;;  %v298_v60 = vadd.f32 %v273_v50, %v53_v42 }
  0xf3   :  { %v346_v58 = vld [vmem:[#allocation2 + $0x48] sm:$0xff]  ;;  %v490_v61 = vmul.f32 %v474_v51, %v865_v35  ;;  %v472_v63 = vmax.f32 %v456_v53, 0.0  ;;  %v459_v1 = vadd.f32 %v894_v14, %v436_v55  ;;  %v434_v5 = vmul.f32 %v867_v36, %v338_v57  ;;  %307 = vst.msk [vmem:[#allocation2 + $0x28] sm:$0xff] %vm22_vm0, %v290_v59 }
  0xf4   :  { %v498_v62 = vmul.f32 %v482_v52, %v406_v4  ;;  %v480_v0 = vmax.f32 %v464_v54, 0.0  ;;  %v467_v2 = vadd.f32 %v894_v14, %v444_v56  ;;  %v442_v6 = vmul.f32 %v885_v3, %v346_v58  ;;  %v343_v7 = vld [vmem:[#allocation2 + $0x30] sm:$0xff]  ;;  %315 = vst.msk [vmem:[#allocation2 + $0x68] sm:$0xff] %vm22_vm0, %v298_v60 }
  0xf5   :  { %v351_v8 = vld [vmem:[#allocation2 + $0x70] sm:$0xff]  ;;  %v626_v35 = vpack.c.bf16 %v490_v61, %v490_v61  ;;  %v488_v10 = vmul.f32 %v472_v63, %v863_v34  ;;  %v475_v13 = vmax.f32 %v459_v1, 0.0  ;;  %v457_v16 = vadd.f32 %v894_v14, %v434_v5 }
  0xf6   :  { %v634_v4 = vpack.c.bf16 %v498_v62, %v498_v62  ;;  %v496_v11 = vmul.f32 %v480_v0, %v879_v48  ;;  %v483_v15 = vmax.f32 %v467_v2, 0.0  ;;  %v465_v17 = vadd.f32 %v894_v14, %v442_v6  ;;  %v341_v18 = vld [vmem:[#allocation2 + $0x20] sm:$0xff] }
  0xf7   :  { %v349_v19 = vld [vmem:[#allocation2 + $0x60] sm:$0xff]  ;;  %571 = vst.msk [vmem:[%s1016_s4 + $0x8] sm:$0xf] %vm568_vm1, %v626_v35  ;;  %v624_v34 = vpack.c.bf16 %v488_v10, %v488_v10  ;;  %v439_v20 = vmul.f32 %v875_v40, %v343_v7  ;;  %v447_v21 = vmul.f32 %v426_v12, %v351_v8  ;;  %v491_v22 = vmul.f32 %v475_v13, %v869_v37 }
  0xf8   :  { %579 = vst.msk [vmem:[%s1016_s4 + $0x28] sm:$0xf] %vm568_vm1, %v634_v4  ;;  %v632_v48 = vpack.c.bf16 %v496_v11, %v496_v11  ;;  %v499_v23 = vmul.f32 %v483_v15, %v411_v28  ;;  %v473_v24 = vmax.f32 %v457_v16, 0.0  ;;  %v481_v25 = vmax.f32 %v465_v17, 0.0  ;;  %v344_v28 = vld [vmem:[#allocation2 + $0x38] sm:$0xff] }
  0xf9   :  { %569 = vst.msk [vmem:[%s1016_s4] sm:$0xf] %vm568_vm1, %v624_v34  ;;  %v462_v26 = vadd.f32 %v894_v14, %v439_v20  ;;  %v470_v27 = vadd.f32 %v894_v14, %v447_v21  ;;  %v437_v30 = vmul.f32 %v871_v38, %v341_v18  ;;  %v445_v37 = vmul.f32 %v899_v29, %v349_v19  ;;  %v352_v31 = vld [vmem:[#allocation2 + $0x78] sm:$0xff] }
  0xfa   :  { %577 = vst.msk [vmem:[%s1016_s4 + $0x20] sm:$0xf] %vm568_vm1, %v632_v48  ;;  %v627_v32 = vpack.c.bf16 %v491_v22, %v491_v22  ;;  %v635_v33 = vpack.c.bf16 %v499_v23, %v499_v23  ;;  %v489_v41 = vmul.f32 %v473_v24, %v867_v36  ;;  %v497_v42 = vmul.f32 %v481_v25, %v885_v3  ;;  %v342_v50 = vld [vmem:[#allocation2 + $0x28] sm:$0xff] }
  0xfb   :  { %v478_v44 = vmax.f32 %v462_v26, 0.0  ;;  %v486_v45 = vmax.f32 %v470_v27, 0.0  ;;  %v460_v46 = vadd.f32 %v894_v14, %v437_v30  ;;  %v468_v49 = vadd.f32 %v894_v14, %v445_v37  ;;  %v350_v51 = vld [vmem:[#allocation2 + $0x68] sm:$0xff] }
  0xfc   :  { %572 = vst.msk [vmem:[%s1016_s4 + $0xc] sm:$0xf] %vm568_vm1, %v627_v32  ;;  %580 = vst.msk [vmem:[%s1016_s4 + $0x2c] sm:$0xf] %vm568_vm1, %v635_v33  ;;  %v625_v36 = vpack.c.bf16 %v489_v41, %v489_v41  ;;  %v633_v3 = vpack.c.bf16 %v497_v42, %v497_v42  ;;  %v440_v52 = vmul.f32 %v877_v47, %v344_v28 }
  0xfd   :  { %v448_v53 = vmul.f32 %v431_v43, %v352_v31  ;;  %v494_v54 = vmul.f32 %v478_v44, %v875_v40  ;;  %v502_v55 = vmul.f32 %v486_v45, %v426_v12  ;;  %v476_v56 = vmax.f32 %v460_v46, 0.0 }
  0xfe   :  { %v484_v57 = vmax.f32 %v468_v49, 0.0  ;;  %570 = vst.msk [vmem:[%s1016_s4 + $0x4] sm:$0xf] %vm568_vm1, %v625_v36  ;;  %578 = vst.msk [vmem:[%s1016_s4 + $0x24] sm:$0xf] %vm568_vm1, %v633_v3  ;;  %v463_v58 = vadd.f32 %v894_v14, %v440_v52  ;;  %v438_v60 = vmul.f32 %v873_v39, %v342_v50  ;;  %v446_v40 = vmul.f32 %v919_v9, %v350_v51 }
  0xff   :  { %v471_v59 = vadd.f32 %v894_v14, %v448_v53  ;;  %v630_v61 = vpack.c.bf16 %v494_v54, %v494_v54  ;;  %v638_v62 = vpack.c.bf16 %v502_v55, %v502_v55  ;;  %v492_v63 = vmul.f32 %v476_v56, %v871_v38 }
 0x100   :  { %v500_v0 = vmul.f32 %v484_v57, %v899_v29  ;;  %v479_v1 = vmax.f32 %v463_v58, 0.0  ;;  %v461_v5 = vadd.f32 %v894_v14, %v438_v60  ;;  %v469_v6 = vadd.f32 %v894_v14, %v446_v40 }
 0x101   :  { %v487_v2 = vmax.f32 %v471_v59, 0.0  ;;  %575 = vst.msk [vmem:[%s1016_s4 + $0x18] sm:$0xf] %vm568_vm1, %v630_v61  ;;  %583 = vst.msk [vmem:[%s1016_s4 + $0x38] sm:$0xf] %vm568_vm1, %v638_v62  ;;  %v628_v7 = vpack.c.bf16 %v492_v63, %v492_v63 }
 0x102   :  { %v636_v38 = vpack.c.bf16 %v500_v0, %v500_v0  ;;  %v495_v29 = vmul.f32 %v479_v1, %v877_v47  ;;  %v477_v35 = vmax.f32 %v461_v5, 0.0  ;;  %v485_v4 = vmax.f32 %v469_v6, 0.0 }
 0x103   :  { %v503_v8 = vmul.f32 %v487_v2, %v431_v43  ;;  %573 = vst.msk [vmem:[%s1016_s4 + $0x10] sm:$0xf] %vm568_vm1, %v628_v7 }
 0x104   :  { %581 = vst.msk [vmem:[%s1016_s4 + $0x30] sm:$0xf] %vm568_vm1, %v636_v38  ;;  %v631_v14 = vpack.c.bf16 %v495_v29, %v495_v29  ;;  %v493_v11 = vmul.f32 %v477_v35, %v873_v39  ;;  %v501_v12 = vmul.f32 %v485_v4, %v919_v9 }
 0x105   :  { %v639_v10 = vpack.c.bf16 %v503_v8, %v503_v8 }
 0x106   :  { %576 = vst.msk [vmem:[%s1016_s4 + $0x1c] sm:$0xf] %vm568_vm1, %v631_v14  ;;  %v629_v47 = vpack.c.bf16 %v493_v11, %v493_v11  ;;  %v637_v13 = vpack.c.bf16 %v501_v12, %v501_v12 }
 0x107   :  { %584 = vst.msk [vmem:[%s1016_s4 + $0x3c] sm:$0xf] %vm568_vm1, %v639_v10 }
 0x108   :  { %574 = vst.msk [vmem:[%s1016_s4 + $0x14] sm:$0xf] %vm568_vm1, %v629_v47  ;;  %582 = vst.msk [vmem:[%s1016_s4 + $0x34] sm:$0xf] %vm568_vm1, %v637_v13 }

// kernel: vgae_forward.5
= control target key start
LH: loop header
LB: loop body
LE: loop exit
PB: predicated region body
PF: predicated region fallthrough
CT: control target
= control target key end

     0   :  { %vm124_vm0 = vcmask 31744   ;;  %s848_s1 = inlined_call_operand.vmem [shape: bf16[128,4], index: 1, kind: input, shape index: {}, may-alias: {0,1}]   ;;  %s849_s0 = inlined_call_operand.vmem [shape: bf16[128,4], index: 0, kind: input, shape index: {}, may-alias: {0,1}]   ;;  %s850_s2 = inlined_call_operand.vmem [shape: bf16[128,128], index: 2, kind: output, shape index: {}]  }
   0x1   :  { %v649_v0 = vld [vmem:[%s848_s1 + $0x38] sm:$0xff]   ;;  %v650_v1 = vld [vmem:[%s848_s1 + $0x30] sm:$0xff]   ;;  %v651_v3 = vld [vmem:[%s848_s1 + $0x28] sm:$0xff]  }
   0x2   :  { %633 = vmatprep.subr.msk.bf16.mxu0 %vm124_vm0, %v649_v0  ;;  %634 = vmatprep.subr.msk.bf16.mxu1 %vm124_vm0, %v649_v0  ;;  %v171_v2 = vsel %vm124_vm0, %v649_v0, 0  ;;  %v168_v4 = vsel %vm124_vm0, %v650_v1, 0  ;;  %v657_v5 = vld [vmem:[%s849_s0] sm:$0xff]   ;;  %v165_v7 = vsel %vm124_vm0, %v651_v3, 0  ;;  %v653_v10 = vld [vmem:[%s848_s1 + $0x18] sm:$0xff]   ;;  %v654_v12 = vld [vmem:[%s848_s1 + $0x10] sm:$0xff]  }
   0x3   :  { %586 = vmatpush3.bf16.xpose.msra.mxu0 %v171_v2  ;;  %625 = vmatpush3.bf16.xpose.msra.mxu1 %v171_v2  ;;  %v658_v6 = vld [vmem:[%s849_s0 + $0x20] sm:$0xff]   ;;  %v159_v11 = vsel %vm124_vm0, %v653_v10, 0  ;;  %v156_v13 = vsel %vm124_vm0, %v654_v12, 0  ;;  %v655_v14 = vld [vmem:[%s848_s1 + $0x8] sm:$0xff]   ;;  %v661_v20 = vld [vmem:[%s849_s0 + $0x10] sm:$0xff]  }
   0x4   :  { %635 = vmatprep.subr.msk.bf16.mxu0 %vm124_vm0, %v650_v1  ;;  %636 = vmatprep.subr.msk.bf16.mxu1 %vm124_vm0, %v650_v1  ;;  %v652_v8 = vld [vmem:[%s848_s1 + $0x20] sm:$0xff]   ;;  %v153_v15 = vsel %vm124_vm0, %v655_v14, 0  ;;  %v659_v18 = vld [vmem:[%s849_s0 + $0x8] sm:$0xff]   ;;  %v662_v21 = vld [vmem:[%s849_s0 + $0x30] sm:$0xff]  }
   0x5   :  { %601 = vmatprep.mubr.msk.bf16.mxu0 %vm124_vm0, %v657_v5  ;;  %609 = vmatprep.mubr.msk.bf16.mxu1 %vm124_vm0, %v658_v6  ;;  %v162_v9 = vsel %vm124_vm0, %v652_v8, 0  ;;  %v656_v16 = vld [vmem:[%s848_s1] sm:$0xff]   ;;  %v660_v19 = vld [vmem:[%s849_s0 + $0x28] sm:$0xff]   ;;  %v663_v22 = vld [vmem:[%s849_s0 + $0x18] sm:$0xff]  }
   0x6   :  { %v150_v17 = vsel %vm124_vm0, %v656_v16, 0  ;;  %v664_v23 = vld [vmem:[%s849_s0 + $0x38] sm:$0xff]  }
   0xb   :  { %588 = vmatpush3.bf16.xpose.msra.mxu0 %v168_v4  ;;  %626 = vmatpush3.bf16.xpose.msra.mxu1 %v168_v4 }
   0xc   :  { %637 = vmatprep.subr.msk.bf16.mxu0 %vm124_vm0, %v651_v3  ;;  %638 = vmatprep.subr.msk.bf16.mxu1 %vm124_vm0, %v651_v3 }
  0x13   :  { %590 = vmatpush3.bf16.xpose.msra.mxu0 %v165_v7  ;;  %627 = vmatpush3.bf16.xpose.msra.mxu1 %v165_v7 }
  0x14   :  { %639 = vmatprep.subr.msk.bf16.mxu0 %vm124_vm0, %v652_v8  ;;  %640 = vmatprep.subr.msk.bf16.mxu1 %vm124_vm0, %v652_v8 }
  0x1b   :  { %592 = vmatpush3.bf16.xpose.msra.mxu0 %v162_v9  ;;  %628 = vmatpush3.bf16.xpose.msra.mxu1 %v162_v9 }
  0x1c   :  { %641 = vmatprep.subr.msk.bf16.mxu0 %vm124_vm0, %v653_v10  ;;  %642 = vmatprep.subr.msk.bf16.mxu1 %vm124_vm0, %v653_v10 }
  0x23   :  { %594 = vmatpush3.bf16.xpose.msra.mxu0 %v159_v11  ;;  %629 = vmatpush3.bf16.xpose.msra.mxu1 %v159_v11 }
  0x24   :  { %643 = vmatprep.subr.msk.bf16.mxu0 %vm124_vm0, %v654_v12  ;;  %644 = vmatprep.subr.msk.bf16.mxu1 %vm124_vm0, %v654_v12 }
  0x2b   :  { %596 = vmatpush3.bf16.xpose.msra.mxu0 %v156_v13  ;;  %630 = vmatpush3.bf16.xpose.msra.mxu1 %v156_v13 }
  0x2c   :  { %645 = vmatprep.subr.msk.bf16.mxu0 %vm124_vm0, %v655_v14  ;;  %646 = vmatprep.subr.msk.bf16.mxu1 %vm124_vm0, %v655_v14 }
  0x33   :  { %598 = vmatpush3.bf16.xpose.msra.mxu0 %v153_v15  ;;  %631 = vmatpush3.bf16.xpose.msra.mxu1 %v153_v15 }
  0x34   :  { %647 = vmatprep.subr.msk.bf16.mxu0 %vm124_vm0, %v656_v16  ;;  %648 = vmatprep.subr.msk.bf16.mxu1 %vm124_vm0, %v656_v16 }
  0x3b   :  { %600 = vmatpush3.bf16.xpose.msra.mxu0 %v150_v17  ;;  %632 = vmatpush3.bf16.xpose.msra.mxu1 %v150_v17 }
  0x42   :  { %602 = vmatmul.mubr.msk.bf16.vlgmr.msra.gmra.mxu0 %vm124_vm0, %v659_v18  ;;  %610 = vmatmul.mubr.msk.bf16.vlgmr.msra.gmra.mxu1 %vm124_vm0, %v660_v19 }
  0x43   :  { %605 = vmatprep.mubr.msk.bf16.mxu0 %vm124_vm0, %v661_v20  ;;  %613 = vmatprep.mubr.msk.bf16.mxu1 %vm124_vm0, %v662_v21 }
  0x4a   :  { %606 = vmatmul.mubr.msk.bf16.gmra.mxu0 %vm124_vm0, %v663_v22  ;;  %614 = vmatmul.mubr.msk.bf16.gmra.mxu1 %vm124_vm0, %v664_v23 }
 0x102   :  { %v603_v24 = vpop.f32.mrf.mxu0  ;;  %v611_v25 = vpop.f32.mrf.mxu1 }
 0x103   :  { %v476_v26 = vmul.f32 -1.442695, %v603_v24  ;;  %v484_v27 = vmul.f32 -1.442695, %v611_v25 }
 0x104   :  { %v207_v28 = vpop.f32.mrf.mxu0  ;;  %v239_v29 = vpop.f32.mrf.mxu1 }
 0x105   :  { %665 = vpow2.f32 %v476_v26  ;;  %v474_v30 = vmul.f32 -1.442695, %v207_v28  ;;  %v482_v31 = vmul.f32 -1.442695, %v239_v29 }
 0x106   :  { %667 = vpow2.f32 %v484_v27  ;;  %v604_v32 = vpop.f32.mrf.mxu0  ;;  %v612_v33 = vpop.f32.mrf.mxu1 }
 0x107   :  { %669 = vpow2.f32 %v474_v30  ;;  %v477_v34 = vmul.f32 -1.442695, %v604_v32  ;;  %v485_v35 = vmul.f32 -1.442695, %v612_v33 }
 0x108   :  { %671 = vpow2.f32 %v482_v31  ;;  %v210_v36 = vpop.f32.mrf.mxu0  ;;  %v242_v37 = vpop.f32.mrf.mxu1 }
 0x109   :  { %673 = vpow2.f32 %v477_v34  ;;  %v475_v38 = vmul.f32 -1.442695, %v210_v36  ;;  %v483_v39 = vmul.f32 -1.442695, %v242_v37 }
 0x10a   :  { %675 = vpow2.f32 %v485_v35  ;;  %v607_v40 = vpop.f32.mrf.mxu0  ;;  %v615_v41 = vpop.f32.mrf.mxu1 }
 0x10b   :  { %677 = vpow2.f32 %v475_v38  ;;  %v480_v42 = vmul.f32 -1.442695, %v607_v40  ;;  %v488_v43 = vmul.f32 -1.442695, %v615_v41 }
 0x10c   :  { %679 = vpow2.f32 %v483_v39  ;;  %v223_v44 = vpop.f32.mrf.mxu0  ;;  %v255_v45 = vpop.f32.mrf.mxu1 }
 0x10d   :  { %681 = vpow2.f32 %v480_v42  ;;  %v478_v46 = vmul.f32 -1.442695, %v223_v44  ;;  %v486_v47 = vmul.f32 -1.442695, %v255_v45 }
 0x10e   :  { %683 = vpow2.f32 %v488_v43  ;;  %v608_v48 = vpop.f32.mrf.mxu0  ;;  %v616_v49 = vpop.f32.mrf.mxu1 }
 0x10f   :  { %685 = vpow2.f32 %v478_v46  ;;  %v481_v50 = vmul.f32 -1.442695, %v608_v48  ;;  %v489_v51 = vmul.f32 -1.442695, %v616_v49 }
 0x110   :  { %687 = vpow2.f32 %v486_v47  ;;  %v226_v52 = vpop.f32.mrf.mxu0  ;;  %v258_v53 = vpop.f32.mrf.mxu1 }
 0x111   :  { %689 = vpow2.f32 %v481_v50  ;;  %v479_v54 = vmul.f32 -1.442695, %v226_v52  ;;  %v487_v55 = vmul.f32 -1.442695, %v258_v53 }
 0x112   :  { %v666_v56 = vpop.eup %665  ;;  %691 = vpow2.f32 %v489_v51 }
 0x113   :  { %v668_v57 = vpop.eup %667  ;;  %v320_v58 = vadd.f32 1.0, %v666_v56  ;;  %693 = vpow2.f32 %v479_v54 }
 0x114   :  { %v670_v59 = vpop.eup %669  ;;  %v328_v60 = vadd.f32 1.0, %v668_v57  ;;  %695 = vpow2.f32 %v487_v55 }
 0x115   :  { %v672_v61 = vpop.eup %671  ;;  %697 = vrcp.f32 %v320_v58  ;;  %v318_v62 = vadd.f32 1.0, %v670_v59 }
 0x116   :  { %v674_v63 = vpop.eup %673  ;;  %699 = vrcp.f32 %v328_v60  ;;  %v326_v0 = vadd.f32 1.0, %v672_v61 }
 0x117   :  { %v676_v1 = vpop.eup %675  ;;  %701 = vrcp.f32 %v318_v62  ;;  %v321_v2 = vadd.f32 1.0, %v674_v63 }
 0x118   :  { %v678_v3 = vpop.eup %677  ;;  %703 = vrcp.f32 %v326_v0  ;;  %v329_v4 = vadd.f32 1.0, %v676_v1 }
 0x119   :  { %v680_v5 = vpop.eup %679  ;;  %705 = vrcp.f32 %v321_v2  ;;  %v319_v6 = vadd.f32 1.0, %v678_v3 }
 0x11a   :  { %v682_v7 = vpop.eup %681  ;;  %707 = vrcp.f32 %v329_v4  ;;  %v327_v8 = vadd.f32 1.0, %v680_v5 }
 0x11b   :  { %v684_v9 = vpop.eup %683  ;;  %709 = vrcp.f32 %v319_v6  ;;  %v324_v10 = vadd.f32 1.0, %v682_v7 }
 0x11c   :  { %v686_v11 = vpop.eup %685  ;;  %711 = vrcp.f32 %v327_v8  ;;  %v332_v12 = vadd.f32 1.0, %v684_v9 }
 0x11d   :  { %v688_v13 = vpop.eup %687  ;;  %713 = vrcp.f32 %v324_v10  ;;  %v322_v14 = vadd.f32 1.0, %v686_v11 }
 0x11e   :  { %v690_v15 = vpop.eup %689  ;;  %715 = vrcp.f32 %v332_v12  ;;  %v330_v16 = vadd.f32 1.0, %v688_v13 }
 0x11f   :  { %v692_v17 = vpop.eup %691  ;;  %717 = vrcp.f32 %v322_v14  ;;  %v325_v18 = vadd.f32 1.0, %v690_v15 }
 0x120   :  { %v694_v19 = vpop.eup %693  ;;  %719 = vrcp.f32 %v330_v16  ;;  %v333_v20 = vadd.f32 1.0, %v692_v17 }
 0x121   :  { %v696_v21 = vpop.eup %695  ;;  %721 = vrcp.f32 %v325_v18  ;;  %v323_v22 = vadd.f32 1.0, %v694_v19 }
 0x122   :  { %v698_v23 = vpop.eup %697  ;;  %723 = vrcp.f32 %v333_v20  ;;  %v331_v24 = vadd.f32 1.0, %v696_v21 }
 0x123   :  { %v700_v25 = vpop.eup %699  ;;  %725 = vrcp.f32 %v323_v22 }
 0x124   :  { %v702_v26 = vpop.eup %701  ;;  %727 = vrcp.f32 %v331_v24 }
 0x125   :  { %v704_v27 = vpop.eup %703 }
 0x126   :  { %v706_v28 = vpop.eup %705 }
 0x127   :  { %v708_v29 = vpop.eup %707  ;;  %v530_v30 = vpack.c.bf16 %v706_v28, %v698_v23 }
 0x128   :  { %v710_v31 = vpop.eup %709  ;;  %v550_v32 = vpack.c.bf16 %v708_v29, %v700_v25 }
 0x129   :  { %v712_v33 = vpop.eup %711  ;;  %562 = vst [vmem:[%s850_s2 + $0x8] sm:$0xff] %v530_v30   ;;  %v525_v34 = vpack.c.bf16 %v710_v31, %v702_v26 }
 0x12a   :  { %v714_v35 = vpop.eup %713  ;;  %566 = vst [vmem:[%s850_s2 + $0x28] sm:$0xff] %v550_v32   ;;  %v545_v36 = vpack.c.bf16 %v712_v33, %v704_v27 }
 0x12b   :  { %v716_v37 = vpop.eup %715  ;;  %526 = vst [vmem:[%s850_s2] sm:$0xff] %v525_v34  }
 0x12c   :  { %v718_v38 = vpop.eup %717  ;;  %565 = vst [vmem:[%s850_s2 + $0x20] sm:$0xff] %v545_v36  }
 0x12d   :  { %v720_v39 = vpop.eup %719 }
 0x12e   :  { %v722_v40 = vpop.eup %721 }
 0x12f   :  { %v724_v41 = vpop.eup %723  ;;  %v540_v42 = vpack.c.bf16 %v722_v40, %v714_v35 }
 0x130   :  { %v726_v43 = vpop.eup %725  ;;  %v560_v44 = vpack.c.bf16 %v724_v41, %v716_v37 }
 0x131   :  { %v728_v45 = vpop.eup %727  ;;  %564 = vst [vmem:[%s850_s2 + $0x18] sm:$0xff] %v540_v42   ;;  %v535_v46 = vpack.c.bf16 %v726_v43, %v718_v38 }
 0x132   :  { %568 = vst [vmem:[%s850_s2 + $0x38] sm:$0xff] %v560_v44   ;;  %v555_v47 = vpack.c.bf16 %v728_v45, %v720_v39 }
 0x133   :  { %563 = vst [vmem:[%s850_s2 + $0x10] sm:$0xff] %v535_v46  }
 0x134   :  { %567 = vst [vmem:[%s850_s2 + $0x30] sm:$0xff] %v555_v47  }

</bundles_post_ra>
